<compile_context>
chip_gen: v7x
topology: tpu7x:2x2x1
jax: 0.10.0
libtpu: 0.0.40
codegen_flags: <defaults>
</compile_context>

<pallas_src>
import jax
import jax.numpy as jnp
import numpy as np
from jax.experimental import pallas as pl
from jax.experimental.pallas import tpu as pltpu


def _make_kernel(L, power):
    sqrt_p = float(np.sqrt(float(power)))

    def kernel(h_ref, t_ref, v0_ref, out_ref):
        # h: (B*2Nt, B*2Nt) block-diagonal real embedding of H (all batches).
        # t: (L, 3, B*2Nt, B*2Nt) folded T = X+Y+Z per (iteration, F/G/J),
        #    block-diagonally replicated across the batch.
        # v: (B*2Nt, d) stacked [Vr; Vi] per batch along the sublane axis.
        h = h_ref[...]                 # resident for all L iterations
        v = v0_ref[...]                # carried in registers across iterations
        for l in range(L):             # small static L -> unrolled
            for k in range(3):         # F, G, J blocks: v <- T @ (H @ v)
                hv = jnp.dot(h, v, preferred_element_type=jnp.float32)
                v = jnp.dot(t_ref[l, k], hv, preferred_element_type=jnp.float32)
            # proj_power: sum of squares of stacked real/imag planes over ALL
            # batches == sum(Re(v * conj(v))) of the complex precoder.
            pw = jnp.sum(v * v)
            v = v * (sqrt_p * jax.lax.rsqrt(pw + jnp.float32(1e-12)))
        out_ref[...] = v

    return kernel


def novel_beamformer_forward(H, V0, params, power=1.0):
    """H: (B, Nr, Nt) complex64 (Nr == Nt); V0: (B, Nt, d) complex64;
    params: (L, 9, Nt, Nt) complex64 ordered [F.X,F.Y,F.Z,G.X,G.Y,G.Z,J.X,J.Y,J.Z]."""
    B, Nr, Nt = H.shape
    assert Nr == Nt, "module semantics require Nr == Nt"
    L = params.shape[0]
    d = V0.shape[-1]
    N2 = 2 * Nt
    BN2 = B * N2

    # ---------- plain-JAX glue (exact algebra, no semantic change) ----------
    # A = E = I  =>  A^H X + A Y + Z == X + Y + Z.
    T = params.reshape(L, 3, 3, Nt, Nt).sum(axis=2)          # (L, 3, Nt, Nt) complex

    def remb(M):
        """Real embedding of a complex matrix: [[Re, -Im], [Im, Re]]."""
        Mr = jnp.real(M).astype(jnp.float32)
        Mi = jnp.imag(M).astype(jnp.float32)
        top = jnp.concatenate([Mr, -Mi], axis=-1)
        bot = jnp.concatenate([Mi, Mr], axis=-1)
        return jnp.concatenate([top, bot], axis=-2)

    eye_b = jnp.eye(B, dtype=jnp.float32)
    Hemb = remb(H)                                            # (B, 2Nt, 2Nt)
    Temb = remb(T)                                            # (L, 3, 2Nt, 2Nt)
    # Fold the batch into block-diagonal operators so a whole pblock is one dot.
    Hbd = jnp.einsum("ab,aij->aibj", eye_b, Hemb).reshape(BN2, BN2)
    Tbd = jnp.einsum("ab,lkij->lkaibj", eye_b, Temb).reshape(L, 3, BN2, BN2)
    # Stack the precoder as [Vr; Vi] per batch along the sublane axis.
    V0s = jnp.concatenate([jnp.real(V0), jnp.imag(V0)], axis=1)   # (B, 2Nt, d)
    V0s = V0s.astype(jnp.float32).reshape(BN2, d)

    # ---------- single pallas_call, no grid (L loop lives inside) ----------
    vmem = pl.BlockSpec(memory_space=pltpu.MemorySpace.VMEM)
    out = pl.pallas_call(
        _make_kernel(L, power),
        out_shape=jax.ShapeDtypeStruct((BN2, d), jnp.float32),
        in_specs=[vmem, vmem, vmem],
        out_specs=vmem,
    )(Hbd, Tbd, V0s)

    out = out.reshape(B, 2, Nt, d)
    return out[:, 0] + 1j * out[:, 1]


def reference_forward(H, V0, params, power=1.0):
    """Pure-JAX (complex64) reference mirroring the PyTorch forward."""
    B, Nr, Nt = H.shape
    eye = jnp.eye(Nt, dtype=jnp.complex64)
    A = jnp.broadcast_to(eye, (B, Nt, Nt))
    E = A

    def pblock(p, Am, Hm, Vm):
        X, Y, Z = p[0], p[1], p[2]
        term = jnp.conj(jnp.swapaxes(Am, -1, -2)) @ X + Am @ Y + Z
        return term @ (Hm @ Vm)

    V = V0
    with jax.default_matmul_precision("highest"):
        for l in range(params.shape[0]):
            U = pblock(params[l, 0:3], A, H, V)
            W = pblock(params[l, 3:6], E, H, U)
            Vn = pblock(params[l, 6:9], A, H, W)
            pw = jnp.sum(jnp.real(Vn * jnp.conj(Vn)))
            V = Vn * jnp.sqrt(power / (pw + 1e-12))
    return V


if __name__ == "__main__":
    B, Nr, Nt, d, L = 2, 16, 16, 8, 3
    power = 1.0

    key = jax.random.PRNGKey(0)
    k1, k2, k3, k4, k5, k6 = jax.random.split(key, 6)

    H = (jax.random.normal(k1, (B, Nr, Nt))
         + 1j * jax.random.normal(k2, (B, Nr, Nt))).astype(jnp.complex64)
    V0 = (jax.random.normal(k3, (B, Nt, d))
          + 1j * jax.random.normal(k4, (B, Nt, d))).astype(jnp.complex64)
    # mimic the module's isotropic init: project V0 to the power budget
    pw0 = jnp.sum(jnp.real(V0 * jnp.conj(V0)))
    V0 = V0 * jnp.sqrt(power / (pw0 + 1e-12))

    # L iteration blocks x (F, G, J) x (X, Y, Z), each 0.1 * randn complex (Nt, Nt)
    params = (0.1 * (jax.random.normal(k5, (L, 9, Nt, Nt))
                     + 1j * jax.random.normal(k6, (L, 9, Nt, Nt)))).astype(jnp.complex64)

    V = jax.block_until_ready(novel_beamformer_forward(H, V0, params, power))

    V_ref = reference_forward(H, V0, params, power)
    err = float(np.max(np.abs(np.asarray(V) - np.asarray(V_ref))))
    assert np.allclose(np.asarray(V), np.asarray(V_ref), rtol=5e-2, atol=5e-3), err

    print("KERNEL_OK")
</pallas_src>

<mosaic_0001>
module attributes {stable_mosaic.version = 11 : i64} {
  func.func @kernel(%arg0: memref<64x64xf32, #tpu.memory_space<vmem>>, %arg1: memref<3x3x64x64xf32, #tpu.memory_space<vmem>>, %arg2: memref<64x8xf32, #tpu.memory_space<vmem>>, %arg3: memref<64x8xf32, #tpu.memory_space<vmem>>) attributes {dimension_semantics = [], scalar_prefetch = 0 : i64, scratch_operands = 0 : i64, tpu.core_type = #tpu.core_type<tc>} {
    %c0 = arith.constant 0 : index
    %c0_0 = arith.constant 0 : index
    %0 = vector.load %arg0[%c0, %c0_0] : memref<64x64xf32, #tpu.memory_space<vmem>>, vector<64x64xf32>
    %c0_1 = arith.constant 0 : index
    %c0_2 = arith.constant 0 : index
    %1 = vector.load %arg2[%c0_1, %c0_2] : memref<64x8xf32, #tpu.memory_space<vmem>>, vector<64x8xf32>
    %cst = arith.constant dense<0.000000e+00> : vector<64x8xf32>
    %2 = tpu.matmul %0, %1, %cst {dimension_numbers = #tpu.dot_dimension_numbers<[1], [0], [0], [1], [0, 0, 1, 1], [], []>} : vector<64x64xf32>, vector<64x8xf32>, vector<64x8xf32> -> vector<64x8xf32>
    %c0_3 = arith.constant 0 : index
    %c0_4 = arith.constant 0 : index
    %c0_5 = arith.constant 0 : index
    %c0_6 = arith.constant 0 : index
    %3 = vector.load %arg1[%c0_3, %c0_4, %c0_5, %c0_6] : memref<3x3x64x64xf32, #tpu.memory_space<vmem>>, vector<1x1x64x64xf32>
    %4 = vector.shape_cast %3 : vector<1x1x64x64xf32> to vector<64x64xf32>
    %cst_7 = arith.constant dense<0.000000e+00> : vector<64x8xf32>
    %5 = tpu.matmul %4, %2, %cst_7 {dimension_numbers = #tpu.dot_dimension_numbers<[1], [0], [0], [1], [0, 0, 1, 1], [], []>} : vector<64x64xf32>, vector<64x8xf32>, vector<64x8xf32> -> vector<64x8xf32>
    %cst_8 = arith.constant dense<0.000000e+00> : vector<64x8xf32>
    %6 = tpu.matmul %0, %5, %cst_8 {dimension_numbers = #tpu.dot_dimension_numbers<[1], [0], [0], [1], [0, 0, 1, 1], [], []>} : vector<64x64xf32>, vector<64x8xf32>, vector<64x8xf32> -> vector<64x8xf32>
    %c0_9 = arith.constant 0 : index
    %c1 = arith.constant 1 : index
    %c0_10 = arith.constant 0 : index
    %c0_11 = arith.constant 0 : index
    %7 = vector.load %arg1[%c0_9, %c1, %c0_10, %c0_11] : memref<3x3x64x64xf32, #tpu.memory_space<vmem>>, vector<1x1x64x64xf32>
    %8 = vector.shape_cast %7 : vector<1x1x64x64xf32> to vector<64x64xf32>
    %cst_12 = arith.constant dense<0.000000e+00> : vector<64x8xf32>
    %9 = tpu.matmul %8, %6, %cst_12 {dimension_numbers = #tpu.dot_dimension_numbers<[1], [0], [0], [1], [0, 0, 1, 1], [], []>} : vector<64x64xf32>, vector<64x8xf32>, vector<64x8xf32> -> vector<64x8xf32>
    %cst_13 = arith.constant dense<0.000000e+00> : vector<64x8xf32>
    %10 = tpu.matmul %0, %9, %cst_13 {dimension_numbers = #tpu.dot_dimension_numbers<[1], [0], [0], [1], [0, 0, 1, 1], [], []>} : vector<64x64xf32>, vector<64x8xf32>, vector<64x8xf32> -> vector<64x8xf32>
    %c0_14 = arith.constant 0 : index
    %c2 = arith.constant 2 : index
    %c0_15 = arith.constant 0 : index
    %c0_16 = arith.constant 0 : index
    %11 = vector.load %arg1[%c0_14, %c2, %c0_15, %c0_16] : memref<3x3x64x64xf32, #tpu.memory_space<vmem>>, vector<1x1x64x64xf32>
    %12 = vector.shape_cast %11 : vector<1x1x64x64xf32> to vector<64x64xf32>
    %cst_17 = arith.constant dense<0.000000e+00> : vector<64x8xf32>
    %13 = tpu.matmul %12, %10, %cst_17 {dimension_numbers = #tpu.dot_dimension_numbers<[1], [0], [0], [1], [0, 0, 1, 1], [], []>} : vector<64x64xf32>, vector<64x8xf32>, vector<64x8xf32> -> vector<64x8xf32>
    %14 = arith.mulf %13, %13 : vector<64x8xf32>
    %15 = vector.shape_cast %14 : vector<64x8xf32> to vector<1x64x8xf32>
    %cst_18 = arith.constant dense<0.000000e+00> : vector<1xf32>
    %16 = vector.multi_reduction <add>, %15, %cst_18 [1, 2] : vector<1x64x8xf32> to vector<1xf32>
    %17 = vector.shape_cast %16 : vector<1xf32> to vector<1x1x1xf32>
    %18 = vector.extract %17[0, 0, 0] : f32 from vector<1x1x1xf32>
    %cst_19 = arith.constant 9.99999996E-13 : f32
    %19 = arith.addf %18, %cst_19 : f32
    %20 = math.rsqrt %19 : f32
    %cst_20 = arith.constant 1.000000e+00 : f32
    %21 = arith.mulf %cst_20, %20 : f32
    %22 = vector.broadcast %21 : f32 to vector<64x8xf32>
    %23 = arith.mulf %13, %22 : vector<64x8xf32>
    %cst_21 = arith.constant dense<0.000000e+00> : vector<64x8xf32>
    %24 = tpu.matmul %0, %23, %cst_21 {dimension_numbers = #tpu.dot_dimension_numbers<[1], [0], [0], [1], [0, 0, 1, 1], [], []>} : vector<64x64xf32>, vector<64x8xf32>, vector<64x8xf32> -> vector<64x8xf32>
    %c1_22 = arith.constant 1 : index
    %c0_23 = arith.constant 0 : index
    %c0_24 = arith.constant 0 : index
    %c0_25 = arith.constant 0 : index
    %25 = vector.load %arg1[%c1_22, %c0_23, %c0_24, %c0_25] : memref<3x3x64x64xf32, #tpu.memory_space<vmem>>, vector<1x1x64x64xf32>
    %26 = vector.shape_cast %25 : vector<1x1x64x64xf32> to vector<64x64xf32>
    %cst_26 = arith.constant dense<0.000000e+00> : vector<64x8xf32>
    %27 = tpu.matmul %26, %24, %cst_26 {dimension_numbers = #tpu.dot_dimension_numbers<[1], [0], [0], [1], [0, 0, 1, 1], [], []>} : vector<64x64xf32>, vector<64x8xf32>, vector<64x8xf32> -> vector<64x8xf32>
    %cst_27 = arith.constant dense<0.000000e+00> : vector<64x8xf32>
    %28 = tpu.matmul %0, %27, %cst_27 {dimension_numbers = #tpu.dot_dimension_numbers<[1], [0], [0], [1], [0, 0, 1, 1], [], []>} : vector<64x64xf32>, vector<64x8xf32>, vector<64x8xf32> -> vector<64x8xf32>
    %c1_28 = arith.constant 1 : index
    %c1_29 = arith.constant 1 : index
    %c0_30 = arith.constant 0 : index
    %c0_31 = arith.constant 0 : index
    %29 = vector.load %arg1[%c1_28, %c1_29, %c0_30, %c0_31] : memref<3x3x64x64xf32, #tpu.memory_space<vmem>>, vector<1x1x64x64xf32>
    %30 = vector.shape_cast %29 : vector<1x1x64x64xf32> to vector<64x64xf32>
    %cst_32 = arith.constant dense<0.000000e+00> : vector<64x8xf32>
    %31 = tpu.matmul %30, %28, %cst_32 {dimension_numbers = #tpu.dot_dimension_numbers<[1], [0], [0], [1], [0, 0, 1, 1], [], []>} : vector<64x64xf32>, vector<64x8xf32>, vector<64x8xf32> -> vector<64x8xf32>
    %cst_33 = arith.constant dense<0.000000e+00> : vector<64x8xf32>
    %32 = tpu.matmul %0, %31, %cst_33 {dimension_numbers = #tpu.dot_dimension_numbers<[1], [0], [0], [1], [0, 0, 1, 1], [], []>} : vector<64x64xf32>, vector<64x8xf32>, vector<64x8xf32> -> vector<64x8xf32>
    %c1_34 = arith.constant 1 : index
    %c2_35 = arith.constant 2 : index
    %c0_36 = arith.constant 0 : index
    %c0_37 = arith.constant 0 : index
    %33 = vector.load %arg1[%c1_34, %c2_35, %c0_36, %c0_37] : memref<3x3x64x64xf32, #tpu.memory_space<vmem>>, vector<1x1x64x64xf32>
    %34 = vector.shape_cast %33 : vector<1x1x64x64xf32> to vector<64x64xf32>
    %cst_38 = arith.constant dense<0.000000e+00> : vector<64x8xf32>
    %35 = tpu.matmul %34, %32, %cst_38 {dimension_numbers = #tpu.dot_dimension_numbers<[1], [0], [0], [1], [0, 0, 1, 1], [], []>} : vector<64x64xf32>, vector<64x8xf32>, vector<64x8xf32> -> vector<64x8xf32>
    %36 = arith.mulf %35, %35 : vector<64x8xf32>
    %37 = vector.shape_cast %36 : vector<64x8xf32> to vector<1x64x8xf32>
    %cst_39 = arith.constant dense<0.000000e+00> : vector<1xf32>
    %38 = vector.multi_reduction <add>, %37, %cst_39 [1, 2] : vector<1x64x8xf32> to vector<1xf32>
    %39 = vector.shape_cast %38 : vector<1xf32> to vector<1x1x1xf32>
    %40 = vector.extract %39[0, 0, 0] : f32 from vector<1x1x1xf32>
    %cst_40 = arith.constant 9.99999996E-13 : f32
    %41 = arith.addf %40, %cst_40 : f32
    %42 = math.rsqrt %41 : f32
    %cst_41 = arith.constant 1.000000e+00 : f32
    %43 = arith.mulf %cst_41, %42 : f32
    %44 = vector.broadcast %43 : f32 to vector<64x8xf32>
    %45 = arith.mulf %35, %44 : vector<64x8xf32>
    %cst_42 = arith.constant dense<0.000000e+00> : vector<64x8xf32>
    %46 = tpu.matmul %0, %45, %cst_42 {dimension_numbers = #tpu.dot_dimension_numbers<[1], [0], [0], [1], [0, 0, 1, 1], [], []>} : vector<64x64xf32>, vector<64x8xf32>, vector<64x8xf32> -> vector<64x8xf32>
    %c2_43 = arith.constant 2 : index
    %c0_44 = arith.constant 0 : index
    %c0_45 = arith.constant 0 : index
    %c0_46 = arith.constant 0 : index
    %47 = vector.load %arg1[%c2_43, %c0_44, %c0_45, %c0_46] : memref<3x3x64x64xf32, #tpu.memory_space<vmem>>, vector<1x1x64x64xf32>
    %48 = vector.shape_cast %47 : vector<1x1x64x64xf32> to vector<64x64xf32>
    %cst_47 = arith.constant dense<0.000000e+00> : vector<64x8xf32>
    %49 = tpu.matmul %48, %46, %cst_47 {dimension_numbers = #tpu.dot_dimension_numbers<[1], [0], [0], [1], [0, 0, 1, 1], [], []>} : vector<64x64xf32>, vector<64x8xf32>, vector<64x8xf32> -> vector<64x8xf32>
    %cst_48 = arith.constant dense<0.000000e+00> : vector<64x8xf32>
    %50 = tpu.matmul %0, %49, %cst_48 {dimension_numbers = #tpu.dot_dimension_numbers<[1], [0], [0], [1], [0, 0, 1, 1], [], []>} : vector<64x64xf32>, vector<64x8xf32>, vector<64x8xf32> -> vector<64x8xf32>
    %c2_49 = arith.constant 2 : index
    %c1_50 = arith.constant 1 : index
    %c0_51 = arith.constant 0 : index
    %c0_52 = arith.constant 0 : index
    %51 = vector.load %arg1[%c2_49, %c1_50, %c0_51, %c0_52] : memref<3x3x64x64xf32, #tpu.memory_space<vmem>>, vector<1x1x64x64xf32>
    %52 = vector.shape_cast %51 : vector<1x1x64x64xf32> to vector<64x64xf32>
    %cst_53 = arith.constant dense<0.000000e+00> : vector<64x8xf32>
    %53 = tpu.matmul %52, %50, %cst_53 {dimension_numbers = #tpu.dot_dimension_numbers<[1], [0], [0], [1], [0, 0, 1, 1], [], []>} : vector<64x64xf32>, vector<64x8xf32>, vector<64x8xf32> -> vector<64x8xf32>
    %cst_54 = arith.constant dense<0.000000e+00> : vector<64x8xf32>
    %54 = tpu.matmul %0, %53, %cst_54 {dimension_numbers = #tpu.dot_dimension_numbers<[1], [0], [0], [1], [0, 0, 1, 1], [], []>} : vector<64x64xf32>, vector<64x8xf32>, vector<64x8xf32> -> vector<64x8xf32>
    %c2_55 = arith.constant 2 : index
    %c2_56 = arith.constant 2 : index
    %c0_57 = arith.constant 0 : index
    %c0_58 = arith.constant 0 : index
    %55 = vector.load %arg1[%c2_55, %c2_56, %c0_57, %c0_58] : memref<3x3x64x64xf32, #tpu.memory_space<vmem>>, vector<1x1x64x64xf32>
    %56 = vector.shape_cast %55 : vector<1x1x64x64xf32> to vector<64x64xf32>
    %cst_59 = arith.constant dense<0.000000e+00> : vector<64x8xf32>
    %57 = tpu.matmul %56, %54, %cst_59 {dimension_numbers = #tpu.dot_dimension_numbers<[1], [0], [0], [1], [0, 0, 1, 1], [], []>} : vector<64x64xf32>, vector<64x8xf32>, vector<64x8xf32> -> vector<64x8xf32>
    %58 = arith.mulf %57, %57 : vector<64x8xf32>
    %59 = vector.shape_cast %58 : vector<64x8xf32> to vector<1x64x8xf32>
    %cst_60 = arith.constant dense<0.000000e+00> : vector<1xf32>
    %60 = vector.multi_reduction <add>, %59, %cst_60 [1, 2] : vector<1x64x8xf32> to vector<1xf32>
    %61 = vector.shape_cast %60 : vector<1xf32> to vector<1x1x1xf32>
    %62 = vector.extract %61[0, 0, 0] : f32 from vector<1x1x1xf32>
    %cst_61 = arith.constant 9.99999996E-13 : f32
    %63 = arith.addf %62, %cst_61 : f32
    %64 = math.rsqrt %63 : f32
    %cst_62 = arith.constant 1.000000e+00 : f32
    %65 = arith.mulf %cst_62, %64 : f32
    %66 = vector.broadcast %65 : f32 to vector<64x8xf32>
    %67 = arith.mulf %57, %66 : vector<64x8xf32>
    %c0_63 = arith.constant 0 : index
    %c0_64 = arith.constant 0 : index
    %68 = vector.load %arg3[%c0_63, %c0_64] : memref<64x8xf32, #tpu.memory_space<vmem>>, vector<64x8xf32>
    tpu.vector_store %arg3[%c0_63, %c0_64], %67 {strides = array<i32>} : memref<64x8xf32, #tpu.memory_space<vmem>>, vector<64x8xf32>,
    return
  }
}

</mosaic_0001>

<bundles_post_ra>
// kernel: tpu_custom_call.1
= control target key start
LH: loop header
LB: loop body
LE: loop exit
PB: predicated region body
PF: predicated region fallthrough
CT: control target
= control target key end

     0   :  { %8 = vsyncpa [#allocation3], 0  ;;  %s3681_s12 = smov [#allocation2]   ;;  %s4089_s0 = inlined_call_operand.vmem [shape: f32[64,64], index: 0, kind: input, shape index: {}]   ;;  %s4090_s1 = inlined_call_operand.hbm [shape: f32[3,3,64,64], index: 1, kind: input, shape index: {}]   ;;  %s4091_s2 = inlined_call_operand.vmem [shape: f32[64,8], index: 2, kind: input, shape index: {}]   ;;  %s4092_s3 = inlined_call_operand.vmem [shape: f32[64,8], index: 3, kind: output, shape index: {}]  }
   0x1   :  { %s16_s13 = sshll.u32 %s3681_s12, 4  ;;  %s3657_s16 = scalar_lea.hbm %s4090_s1, 9216  ;;  %s17_s13 = int_to_ptr.vmem [resolvable:$true] %s16_s13 }
   0x2   :  { %p3658_p0 = scmp.ne.s32.totalorder %s4090_s1, %s3657_s16  ;;  %p3661_p1 = scmp.lt.u32.totalorder %s3657_s16, %s4090_s1 }
   0x4   :  { %p3663_p2 = pnand %p3661_p1, %p3658_p0 }
   0x6   :  { %3666 = shalt.err (!%p3663_p2)
}
   0x7   :  { %s3667_s21 = scalar_lea.vmem %s17_s13, 9216  ;;  %p3672_p4 = scmp.lt.s32.totalorder %s17_s13, %s17_s13 }
   0x8   :  { %p3668_p3 = scmp.ne.s32.totalorder %s17_s13, %s3667_s21  ;;  %p3673_p5 = scmp.lt.s32.totalorder %s3667_s21, %s3667_s21 }
   0xa   :  { %p3674_p6 = por %p3673_p5, %p3672_p4 }
   0xc   :  { %p3675_p7 = pnand %p3674_p6, %p3668_p3 }
   0xe   :  { %3678 = shalt.err (!%p3675_p7)
}
   0xf   :  { %s3682_s22 = smov 128   ;;  %s3683_s23 = smov 8  }
  0x10   :  { %22 = dma.hbm_to_vmem [thread:$0]  %s4090_s1, 9216, %s17_s13, [#allocation3], %s3682_s22, %s3682_s22, %s3683_s23  }
  0x11   :  { %3679 = dma.done.wait [#allocation3], 9216  }
  0x12   :  { %3680 = vsyncadd [#allocation3], 4294958080  ;;  %v36_v0 = vld [vmem:[%s4091_s2] sm:$0xff]  ;;  %v37_v1 = vld [vmem:[%s4091_s2 + $0x8] sm:$0xff]  ;;  %vm44_vm0 = vcmask 523264   ;;  %vm805_vm1 = vcmask 64512  }
  0x13   :  { %v38_v2 = vld [vmem:[%s4091_s2 + $0x10] sm:$0xff]  ;;  %v3340_v3 = vpack.c.bf16 %v37_v1, %v36_v0  ;;  %v39_v4 = vld [vmem:[%s4091_s2 + $0x18] sm:$0xff]  ;;  %v40_v6 = vld [vmem:[%s4091_s2 + $0x20] sm:$0xff] }
  0x14   :  { %v3344_v5 = vpack.c.bf16 %v39_v4, %v38_v2  ;;  %v41_v7 = vld [vmem:[%s4091_s2 + $0x28] sm:$0xff]  ;;  %v3737_v8 = vld [vmem:[%s4089_s0] sm:$0xff]  ;;  %v42_v10 = vld [vmem:[%s4091_s2 + $0x30] sm:$0xff] }
  0x15   :  { %3341 = vmatprep.subr.bf16.mxu0 %v3340_v3  ;;  %2852 = vmatprep.mubr.msk.f32.mxu0 %vm44_vm0, %v3737_v8  ;;  %v3348_v9 = vpack.c.bf16 %v41_v7, %v40_v6  ;;  %v43_v11 = vld [vmem:[%s4091_s2 + $0x38] sm:$0xff]  ;;  %v3750_v13 = vld [vmem:[%s4089_s0 + $0x8] sm:$0xff]  ;;  %v3755_v14 = vld [vmem:[%s4089_s0 + $0x10] sm:$0xff] }
  0x16   :  { %3343 = vmatpush3.bf16.msra.mxu0 %v3340_v3  ;;  %v3352_v12 = vpack.c.bf16 %v43_v11, %v42_v10  ;;  %v3764_v15 = vld [vmem:[%s4089_s0 + $0x18] sm:$0xff]  ;;  %v3769_v16 = vld [vmem:[%s4089_s0 + $0x20] sm:$0xff]  ;;  %v3778_v17 = vld [vmem:[%s4089_s0 + $0x28] sm:$0xff] }
  0x17   :  { %3345 = vmatprep.subr.bf16.mxu0 %v3344_v5  ;;  %v3783_v18 = vld [vmem:[%s4089_s0 + $0x30] sm:$0xff]  ;;  %v3792_v19 = vld [vmem:[%s4089_s0 + $0x38] sm:$0xff]  ;;  %v174_v20 = vld [vmem:[#allocation2] sm:$0xff] }
  0x18   :  { %2880 = vmatprep.mubr.msk.f32.mxu1 %vm44_vm0, %v174_v20  ;;  %v175_v33 = vld [vmem:[#allocation2 + $0x8] sm:$0xff]  ;;  %v176_v34 = vld [vmem:[#allocation2 + $0x10] sm:$0xff]  ;;  %v177_v35 = vld [vmem:[#allocation2 + $0x18] sm:$0xff] }
  0x19   :  { %v178_v36 = vld [vmem:[#allocation2 + $0x20] sm:$0xff]  ;;  %v179_v37 = vld [vmem:[#allocation2 + $0x28] sm:$0xff]  ;;  %v180_v38 = vld [vmem:[#allocation2 + $0x30] sm:$0xff] }
  0x1a   :  { %3347 = vmatpush3.bf16.msra.mxu0 %v3344_v5  ;;  %v181_v39 = vld [vmem:[#allocation2 + $0x38] sm:$0xff]  ;;  %v417_v52 = vld [vmem:[#allocation2 + $0x40] sm:$0xff]  ;;  %v418_v1 = vld [vmem:[#allocation2 + $0x48] sm:$0xff] }
  0x1b   :  { %3349 = vmatprep.subr.bf16.mxu0 %v3348_v9  ;;  %v419_v2 = vld [vmem:[#allocation2 + $0x50] sm:$0xff]  ;;  %v420_v3 = vld [vmem:[#allocation2 + $0x58] sm:$0xff]  ;;  %v421_v4 = vld [vmem:[#allocation2 + $0x60] sm:$0xff] }
  0x1c   :  { %v422_v5 = vld [vmem:[#allocation2 + $0x68] sm:$0xff]  ;;  %v423_v6 = vld [vmem:[#allocation2 + $0x70] sm:$0xff]  ;;  %v424_v7 = vld [vmem:[#allocation2 + $0x78] sm:$0xff] }
  0x1e   :  { %3351 = vmatpush3.bf16.msra.mxu0 %v3348_v9 }
  0x1f   :  { %3353 = vmatprep.subr.bf16.mxu0 %v3352_v12 }
  0x22   :  { %3355 = vmatpush3.bf16.msra.mxu0 %v3352_v12 }
  0x25   :  { %2853 = vmatmul.mubr.msk.f32.vlgmr.msra.gmra.mrb[0].mxu0 %vm44_vm0, %v3750_v13 }
  0x26   :  { %2855 = vmatprep.mubr.msk.f32.mxu0 %vm44_vm0, %v3755_v14 }
  0x29   :  { %2856 = vmatmul.mubr.msk.f32.gmra.mrb[2].mxu0 %vm44_vm0, %v3764_v15 }
  0x2a   :  { %2858 = vmatprep.mubr.msk.f32.mxu0 %vm44_vm0, %v3769_v16 }
  0x2d   :  { %2859 = vmatmul.mubr.msk.f32.gmra.mrb[4].mxu0 %vm44_vm0, %v3778_v17 }
  0x2e   :  { %2861 = vmatprep.mubr.msk.f32.mxu0 %vm44_vm0, %v3783_v18 }
  0x31   :  { %2862 = vmatmul.mubr.msk.f32.gmra.mrb[6].mxu0 %vm44_vm0, %v3792_v19 }
  0x32   :  { %2908 = vmatprep.mubr.msk.f32.mxu0 %vm44_vm0, %v3737_v8 }
  0xf8   :  { %v2854_v21 = vpop.f32.mrb[0].mxu0 }
  0xf9   :  { %v135_v22 = vpop.f32.mrb[1].mxu0 }
  0xfa   :  { %v3356_v23 = vpack.c.bf16 %v2854_v21, %v135_v22 }
  0xfc   :  { %v2857_v24 = vpop.f32.mrb[2].mxu0  ;;  %3357 = vmatprep.subr.bf16.mxu1 %v3356_v23 }
  0xfd   :  { %v145_v25 = vpop.f32.mrb[3].mxu0  ;;  %3359 = vmatpush3.bf16.msra.mxu1 %v3356_v23 }
  0xfe   :  { %v3360_v26 = vpack.c.bf16 %v2857_v24, %v145_v25 }
 0x100   :  { %v2860_v27 = vpop.f32.mrb[4].mxu0  ;;  %3361 = vmatprep.subr.bf16.mxu1 %v3360_v26 }
 0x101   :  { %v155_v28 = vpop.f32.mrb[5].mxu0  ;;  %3363 = vmatpush3.bf16.msra.mxu1 %v3360_v26 }
 0x102   :  { %v3364_v29 = vpack.c.bf16 %v2860_v27, %v155_v28  ;;  %v660_v28 = vld [vmem:[#allocation2 + $0x80] sm:$0xff] }
 0x104   :  { %v2863_v30 = vpop.f32.mrb[6].mxu0  ;;  %3365 = vmatprep.subr.bf16.mxu1 %v3364_v29 }
 0x105   :  { %v165_v31 = vpop.f32.mrb[7].mxu0  ;;  %3367 = vmatpush3.bf16.msra.mxu1 %v3364_v29 }
 0x106   :  { %v3368_v32 = vpack.c.bf16 %v2863_v30, %v165_v31 }
 0x108   :  { %3369 = vmatprep.subr.bf16.mxu1 %v3368_v32 }
 0x109   :  { %3371 = vmatpush3.bf16.msra.mxu1 %v3368_v32 }
 0x10c   :  { %2881 = vmatmul.mubr.msk.f32.vlgmr.msra.gmra.mrb[0].mxu1 %vm44_vm0, %v175_v33 }
 0x10d   :  { %2883 = vmatprep.mubr.msk.f32.mxu1 %vm44_vm0, %v176_v34 }
 0x110   :  { %2884 = vmatmul.mubr.msk.f32.gmra.mrb[2].mxu1 %vm44_vm0, %v177_v35 }
 0x111   :  { %2886 = vmatprep.mubr.msk.f32.mxu1 %vm44_vm0, %v178_v36 }
 0x114   :  { %2887 = vmatmul.mubr.msk.f32.gmra.mrb[4].mxu1 %vm44_vm0, %v179_v37 }
 0x115   :  { %2889 = vmatprep.mubr.msk.f32.mxu1 %vm44_vm0, %v180_v38 }
 0x118   :  { %2890 = vmatmul.mubr.msk.f32.gmra.mrb[6].mxu1 %vm44_vm0, %v181_v39 }
 0x119   :  { %2936 = vmatprep.mubr.msk.f32.mxu1 %vm44_vm0, %v417_v52 }
 0x1df   :  { %v2882_v40 = vpop.f32.mrb[0].mxu1 }
 0x1e0   :  { %v272_v41 = vpop.f32.mrb[1].mxu1 }
 0x1e1   :  { %v3372_v42 = vpack.c.bf16 %v2882_v40, %v272_v41  ;;  %v661_v41 = vld [vmem:[#allocation2 + $0x88] sm:$0xff] }
 0x1e3   :  { %v2885_v43 = vpop.f32.mrb[2].mxu1  ;;  %3373 = vmatprep.subr.bf16.mxu0 %v3372_v42 }
 0x1e4   :  { %v282_v44 = vpop.f32.mrb[3].mxu1  ;;  %3375 = vmatpush3.bf16.msra.mxu0 %v3372_v42  ;;  %v662_v42 = vld [vmem:[#allocation2 + $0x90] sm:$0xff] }
 0x1e5   :  { %v3376_v45 = vpack.c.bf16 %v2885_v43, %v282_v44  ;;  %v663_v43 = vld [vmem:[#allocation2 + $0x98] sm:$0xff]  ;;  %v664_v44 = vld [vmem:[#allocation2 + $0xa0] sm:$0xff] }
 0x1e7   :  { %v2888_v46 = vpop.f32.mrb[4].mxu1  ;;  %3377 = vmatprep.subr.bf16.mxu0 %v3376_v45 }
 0x1e8   :  { %v292_v47 = vpop.f32.mrb[5].mxu1  ;;  %3379 = vmatpush3.bf16.msra.mxu0 %v3376_v45  ;;  %v665_v45 = vld [vmem:[#allocation2 + $0xa8] sm:$0xff] }
 0x1e9   :  { %v3380_v48 = vpack.c.bf16 %v2888_v46, %v292_v47  ;;  %v666_v46 = vld [vmem:[#allocation2 + $0xb0] sm:$0xff]  ;;  %v667_v47 = vld [vmem:[#allocation2 + $0xb8] sm:$0xff] }
 0x1eb   :  { %v2891_v49 = vpop.f32.mrb[6].mxu1  ;;  %3381 = vmatprep.subr.bf16.mxu0 %v3380_v48 }
 0x1ec   :  { %v302_v50 = vpop.f32.mrb[7].mxu1  ;;  %3383 = vmatpush3.bf16.msra.mxu0 %v3380_v48 }
 0x1ed   :  { %v3384_v51 = vpack.c.bf16 %v2891_v49, %v302_v50 }
 0x1ef   :  { %3385 = vmatprep.subr.bf16.mxu0 %v3384_v51 }
 0x1f0   :  { %3387 = vmatpush3.bf16.msra.mxu0 %v3384_v51 }
 0x1f3   :  { %2909 = vmatmul.mubr.msk.f32.vlgmr.msra.gmra.mrb[8].mxu0 %vm44_vm0, %v3750_v13 }
 0x1f4   :  { %2911 = vmatprep.mubr.msk.f32.mxu0 %vm44_vm0, %v3755_v14 }
 0x1f7   :  { %2912 = vmatmul.mubr.msk.f32.gmra.mrb[10].mxu0 %vm44_vm0, %v3764_v15 }
 0x1f8   :  { %2914 = vmatprep.mubr.msk.f32.mxu0 %vm44_vm0, %v3769_v16 }
 0x1fb   :  { %2915 = vmatmul.mubr.msk.f32.gmra.mrb[12].mxu0 %vm44_vm0, %v3778_v17 }
 0x1fc   :  { %2917 = vmatprep.mubr.msk.f32.mxu0 %vm44_vm0, %v3783_v18 }
 0x1ff   :  { %2918 = vmatmul.mubr.msk.f32.gmra.mrb[14].mxu0 %vm44_vm0, %v3792_v19 }
 0x200   :  { %2964 = vmatprep.mubr.msk.f32.mxu0 %vm44_vm0, %v3737_v8 }
 0x2c6   :  { %v2910_v53 = vpop.f32.mrb[8].mxu0 }
 0x2c7   :  { %v377_v54 = vpop.f32.mrb[9].mxu0 }
 0x2c8   :  { %v3388_v55 = vpack.c.bf16 %v2910_v53, %v377_v54 }
 0x2ca   :  { %v2913_v56 = vpop.f32.mrb[10].mxu0  ;;  %3389 = vmatprep.subr.bf16.mxu1 %v3388_v55 }
 0x2cb   :  { %v387_v57 = vpop.f32.mrb[11].mxu0  ;;  %3391 = vmatpush3.bf16.msra.mxu1 %v3388_v55 }
 0x2cc   :  { %v3392_v58 = vpack.c.bf16 %v2913_v56, %v387_v57 }
 0x2ce   :  { %v2916_v59 = vpop.f32.mrb[12].mxu0  ;;  %3393 = vmatprep.subr.bf16.mxu1 %v3392_v58 }
 0x2cf   :  { %v397_v60 = vpop.f32.mrb[13].mxu0  ;;  %3395 = vmatpush3.bf16.msra.mxu1 %v3392_v58 }
 0x2d0   :  { %v3396_v61 = vpack.c.bf16 %v2916_v59, %v397_v60 }
 0x2d2   :  { %v2919_v62 = vpop.f32.mrb[14].mxu0  ;;  %3397 = vmatprep.subr.bf16.mxu1 %v3396_v61 }
 0x2d3   :  { %v407_v63 = vpop.f32.mrb[15].mxu0  ;;  %3399 = vmatpush3.bf16.msra.mxu1 %v3396_v61 }
 0x2d4   :  { %v3400_v0 = vpack.c.bf16 %v2919_v62, %v407_v63 }
 0x2d6   :  { %3401 = vmatprep.subr.bf16.mxu1 %v3400_v0 }
 0x2d7   :  { %3403 = vmatpush3.bf16.msra.mxu1 %v3400_v0 }
 0x2da   :  { %2937 = vmatmul.mubr.msk.f32.vlgmr.msra.gmra.mrb[8].mxu1 %vm44_vm0, %v418_v1 }
 0x2db   :  { %2939 = vmatprep.mubr.msk.f32.mxu1 %vm44_vm0, %v419_v2 }
 0x2de   :  { %2940 = vmatmul.mubr.msk.f32.gmra.mrb[10].mxu1 %vm44_vm0, %v420_v3 }
 0x2df   :  { %2942 = vmatprep.mubr.msk.f32.mxu1 %vm44_vm0, %v421_v4 }
 0x2e2   :  { %2943 = vmatmul.mubr.msk.f32.gmra.mrb[12].mxu1 %vm44_vm0, %v422_v5 }
 0x2e3   :  { %2945 = vmatprep.mubr.msk.f32.mxu1 %vm44_vm0, %v423_v6 }
 0x2e6   :  { %2946 = vmatmul.mubr.msk.f32.gmra.mrb[14].mxu1 %vm44_vm0, %v424_v7 }
 0x2e7   :  { %2992 = vmatprep.mubr.msk.f32.mxu1 %vm44_vm0, %v660_v28 }
 0x3ad   :  { %v2938_v9 = vpop.f32.mrb[8].mxu1 }
 0x3ae   :  { %v515_v10 = vpop.f32.mrb[9].mxu1 }
 0x3af   :  { %v3404_v11 = vpack.c.bf16 %v2938_v9, %v515_v10 }
 0x3b1   :  { %v2941_v12 = vpop.f32.mrb[10].mxu1  ;;  %3405 = vmatprep.subr.bf16.mxu0 %v3404_v11 }
 0x3b2   :  { %v525_v20 = vpop.f32.mrb[11].mxu1  ;;  %3407 = vmatpush3.bf16.msra.mxu0 %v3404_v11 }
 0x3b3   :  { %v3408_v21 = vpack.c.bf16 %v2941_v12, %v525_v20 }
 0x3b5   :  { %v2944_v22 = vpop.f32.mrb[12].mxu1  ;;  %3409 = vmatprep.subr.bf16.mxu0 %v3408_v21 }
 0x3b6   :  { %v535_v23 = vpop.f32.mrb[13].mxu1  ;;  %3411 = vmatpush3.bf16.msra.mxu0 %v3408_v21 }
 0x3b7   :  { %v3412_v24 = vpack.c.bf16 %v2944_v22, %v535_v23 }
 0x3b9   :  { %v2947_v25 = vpop.f32.mrb[14].mxu1  ;;  %3413 = vmatprep.subr.bf16.mxu0 %v3412_v24 }
 0x3ba   :  { %v545_v26 = vpop.f32.mrb[15].mxu1  ;;  %3415 = vmatpush3.bf16.msra.mxu0 %v3412_v24 }
 0x3bb   :  { %v3416_v27 = vpack.c.bf16 %v2947_v25, %v545_v26 }
 0x3bd   :  { %3417 = vmatprep.subr.bf16.mxu0 %v3416_v27 }
 0x3be   :  { %3419 = vmatpush3.bf16.msra.mxu0 %v3416_v27 }
 0x3c1   :  { %2965 = vmatmul.mubr.msk.f32.vlgmr.msra.gmra.mrb[16].mxu0 %vm44_vm0, %v3750_v13 }
 0x3c2   :  { %2967 = vmatprep.mubr.msk.f32.mxu0 %vm44_vm0, %v3755_v14 }
 0x3c5   :  { %2968 = vmatmul.mubr.msk.f32.gmra.mrb[18].mxu0 %vm44_vm0, %v3764_v15 }
 0x3c6   :  { %2970 = vmatprep.mubr.msk.f32.mxu0 %vm44_vm0, %v3769_v16 }
 0x3c9   :  { %2971 = vmatmul.mubr.msk.f32.gmra.mrb[20].mxu0 %vm44_vm0, %v3778_v17 }
 0x3ca   :  { %2973 = vmatprep.mubr.msk.f32.mxu0 %vm44_vm0, %v3783_v18 }
 0x3cd   :  { %2974 = vmatmul.mubr.msk.f32.gmra.mrb[22].mxu0 %vm44_vm0, %v3792_v19 }
 0x3ce   :  { %3020 = vmatprep.mubr.msk.f32.mxu0 %vm44_vm0, %v3737_v8 }
 0x494   :  { %v2966_v29 = vpop.f32.mrb[16].mxu0 }
 0x495   :  { %v620_v30 = vpop.f32.mrb[17].mxu0 }
 0x496   :  { %v3420_v31 = vpack.c.bf16 %v2966_v29, %v620_v30 }
 0x498   :  { %v2969_v32 = vpop.f32.mrb[18].mxu0  ;;  %3421 = vmatprep.subr.bf16.mxu1 %v3420_v31 }
 0x499   :  { %v630_v33 = vpop.f32.mrb[19].mxu0  ;;  %3423 = vmatpush3.bf16.msra.mxu1 %v3420_v31 }
 0x49a   :  { %v3424_v34 = vpack.c.bf16 %v2969_v32, %v630_v33 }
 0x49c   :  { %v2972_v35 = vpop.f32.mrb[20].mxu0  ;;  %3425 = vmatprep.subr.bf16.mxu1 %v3424_v34 }
 0x49d   :  { %v640_v36 = vpop.f32.mrb[21].mxu0  ;;  %3427 = vmatpush3.bf16.msra.mxu1 %v3424_v34 }
 0x49e   :  { %v3428_v37 = vpack.c.bf16 %v2972_v35, %v640_v36 }
 0x4a0   :  { %v2975_v38 = vpop.f32.mrb[22].mxu0  ;;  %3429 = vmatprep.subr.bf16.mxu1 %v3428_v37 }
 0x4a1   :  { %v650_v39 = vpop.f32.mrb[23].mxu0  ;;  %3431 = vmatpush3.bf16.msra.mxu1 %v3428_v37 }
 0x4a2   :  { %v3432_v40 = vpack.c.bf16 %v2975_v38, %v650_v39 }
 0x4a4   :  { %3433 = vmatprep.subr.bf16.mxu1 %v3432_v40 }
 0x4a5   :  { %3435 = vmatpush3.bf16.msra.mxu1 %v3432_v40 }
 0x4a8   :  { %2993 = vmatmul.mubr.msk.f32.vlgmr.msra.gmra.mrb[16].mxu1 %vm44_vm0, %v661_v41 }
 0x4a9   :  { %2995 = vmatprep.mubr.msk.f32.mxu1 %vm44_vm0, %v662_v42 }
 0x4ac   :  { %2996 = vmatmul.mubr.msk.f32.gmra.mrb[18].mxu1 %vm44_vm0, %v663_v43 }
 0x4ad   :  { %2998 = vmatprep.mubr.msk.f32.mxu1 %vm44_vm0, %v664_v44 }
 0x4b0   :  { %2999 = vmatmul.mubr.msk.f32.gmra.mrb[20].mxu1 %vm44_vm0, %v665_v45  ;;  %v949_v45 = vld [vmem:[#allocation2 + $0xc0] sm:$0xff] }
 0x4b1   :  { %3001 = vmatprep.mubr.msk.f32.mxu1 %vm44_vm0, %v666_v46 }
 0x4b4   :  { %3002 = vmatmul.mubr.msk.f32.gmra.mrb[22].mxu1 %vm44_vm0, %v667_v47 }
 0x4b5   :  { %3048 = vmatprep.mubr.msk.f32.mxu1 %vm44_vm0, %v949_v45 }
 0x57b   :  { %v2994_v48 = vpop.f32.mrb[16].mxu1 }
 0x57c   :  { %v798_v49 = vmul.f32 %v2994_v48, %v2994_v48  ;;  %v758_v50 = vpop.f32.mrb[17].mxu1 }
 0x57d   :  { %v797_v51 = vmul.f32 %v758_v50, %v758_v50 }
 0x57e   :  { %v807_v52 = vsel %vm805_vm1, %v798_v49, 0.0 }
 0x57f   :  { %v806_v53 = vsel %vm805_vm1, %v797_v51, 0.0  ;;  %v2997_v54 = vpop.f32.mrb[18].mxu1 }
 0x580   :  { %v808_v55 = vadd.f32 %v807_v52, %v806_v53  ;;  %v768_v56 = vpop.f32.mrb[19].mxu1  ;;  %v800_v57 = vmul.f32 %v2997_v54, %v2997_v54 }
 0x581   :  { %v799_v58 = vmul.f32 %v768_v56, %v768_v56 }
 0x582   :  { %v811_v63 = vsel %vm805_vm1, %v800_v57, 0.0 }
 0x583   :  { %v809_v59 = vsel %vm805_vm1, %v799_v58, 0.0  ;;  %v3000_v60 = vpop.f32.mrb[20].mxu1  ;;  %v950_v58 = vld [vmem:[#allocation2 + $0xc8] sm:$0xff] }
 0x584   :  { %v810_v61 = vadd.f32 %v809_v59, %v808_v55  ;;  %v778_v62 = vpop.f32.mrb[21].mxu1  ;;  %v802_v0 = vmul.f32 %v3000_v60, %v3000_v60  ;;  %v951_v59 = vld [vmem:[#allocation2 + $0xd0] sm:$0xff] }
 0x585   :  { %v801_v1 = vmul.f32 %v778_v62, %v778_v62 }
 0x586   :  { %v812_v2 = vadd.f32 %v811_v63, %v810_v61  ;;  %v815_v7 = vsel %vm805_vm1, %v802_v0, 0.0  ;;  %v953_v61 = vld [vmem:[#allocation2 + $0xe0] sm:$0xff]  ;;  %v955_v63 = vld [vmem:[#allocation2 + $0xf0] sm:$0xff]  ;;  %v956_v0 = vld [vmem:[#allocation2 + $0xf8] sm:$0xff] }
 0x587   :  { %v813_v3 = vsel %vm805_vm1, %v801_v1, 0.0  ;;  %v3003_v4 = vpop.f32.mrb[22].mxu1 }
 0x588   :  { %v814_v5 = vadd.f32 %v813_v3, %v812_v2  ;;  %v788_v6 = vpop.f32.mrb[23].mxu1  ;;  %v804_v9 = vmul.f32 %v3003_v4, %v3003_v4 }
 0x589   :  { %v803_v10 = vmul.f32 %v788_v6, %v788_v6 }
 0x58a   :  { %v816_v11 = vadd.f32 %v815_v7, %v814_v5  ;;  %v819_v21 = vsel %vm805_vm1, %v804_v9, 0.0 }
 0x58b   :  { %v817_v12 = vsel %vm805_vm1, %v803_v10, 0.0 }
 0x58c   :  { %v818_v20 = vadd.f32 %v817_v12, %v816_v11 }
 0x58e   :  { %v820_v22 = vadd.f32 %v819_v21, %v818_v20  ;;  %v1192_v21 = vld [vmem:[#allocation2 + $0x100] sm:$0xff] }
 0x590   :  { %821 = vadd.xlane.f32.xlu0 %v820_v22 }
 0x61d   :  { %v822_v23 = vpop.xlane.xlu0 %821 }
 0x61e   :  { %v823_v24 = vrot.slane %v822_v23, 4 }
 0x620   :  { %v824_v25 = vadd.f32 %v823_v24, %v822_v23 }
 0x622   :  { %v825_v26 = vrot.slane %v824_v25, 2 }
 0x624   :  { %v826_v27 = vadd.f32 %v825_v26, %v824_v25 }
 0x626   :  { %v827_v28 = vrot.slane %v826_v27, 1 }
 0x628   :  { %v828_v29 = vadd.f32 %v827_v28, %v826_v27 }
 0x62a   :  { %3628 = vpush %v828_v29 }
 0x65b   :  { %s3629_s29 = spop %3628 }
 0x65c   :  { %s830_s30 = sadd.f32 1e-12, %s3629_s29 }
 0x65e   :  { %v831_v30 = vstv %s830_s30 }
 0x65f   :  { %3643 = vrsqrt.f32 %v831_v30 }
 0x669   :  { %v3644_v31 = vpop.eup %3643 }
 0x66a   :  { %3630 = vpush %v3644_v31 }
 0x69b   :  { %s3631_s4 = spop %3630 }
 0x69c   :  { %v834_v32 = vstv %s3631_s4 }
 0x69d   :  { %v835_v33 = vmul.f32 %v834_v32, %v758_v50  ;;  %v836_v34 = vmul.f32 %v2994_v48, %v834_v32  ;;  %v837_v35 = vmul.f32 %v834_v32, %v768_v56  ;;  %v838_v36 = vmul.f32 %v2997_v54, %v834_v32 }
 0x69e   :  { %v839_v37 = vmul.f32 %v834_v32, %v778_v62  ;;  %v840_v38 = vmul.f32 %v3000_v60, %v834_v32  ;;  %v841_v39 = vmul.f32 %v834_v32, %v788_v6  ;;  %v842_v40 = vmul.f32 %v3003_v4, %v834_v32  ;;  %v952_v60 = vld [vmem:[#allocation2 + $0xd8] sm:$0xff]  ;;  %v954_v62 = vld [vmem:[#allocation2 + $0xe8] sm:$0xff] }
 0x69f   :  { %v3436_v41 = vpack.c.bf16 %v836_v34, %v835_v33  ;;  %v3440_v42 = vpack.c.bf16 %v838_v36, %v837_v35  ;;  %v1193_v34 = vld [vmem:[#allocation2 + $0x108] sm:$0xff]  ;;  %v1194_v35 = vld [vmem:[#allocation2 + $0x110] sm:$0xff]  ;;  %v1195_v36 = vld [vmem:[#allocation2 + $0x118] sm:$0xff] }
 0x6a0   :  { %v3444_v43 = vpack.c.bf16 %v840_v38, %v839_v37  ;;  %v3448_v44 = vpack.c.bf16 %v842_v40, %v841_v39  ;;  %v1196_v37 = vld [vmem:[#allocation2 + $0x120] sm:$0xff]  ;;  %v1197_v38 = vld [vmem:[#allocation2 + $0x128] sm:$0xff]  ;;  %v1198_v39 = vld [vmem:[#allocation2 + $0x130] sm:$0xff] }
 0x6a1   :  { %3437 = vmatprep.subr.bf16.mxu0 %v3436_v41  ;;  %v1199_v40 = vld [vmem:[#allocation2 + $0x138] sm:$0xff] }
 0x6a2   :  { %3439 = vmatpush3.bf16.msra.mxu0 %v3436_v41 }
 0x6a3   :  { %3441 = vmatprep.subr.bf16.mxu0 %v3440_v42 }
 0x6a6   :  { %3443 = vmatpush3.bf16.msra.mxu0 %v3440_v42 }
 0x6a7   :  { %3445 = vmatprep.subr.bf16.mxu0 %v3444_v43 }
 0x6aa   :  { %3447 = vmatpush3.bf16.msra.mxu0 %v3444_v43 }
 0x6ab   :  { %3449 = vmatprep.subr.bf16.mxu0 %v3448_v44 }
 0x6ae   :  { %3451 = vmatpush3.bf16.msra.mxu0 %v3448_v44 }
 0x6b1   :  { %3021 = vmatmul.mubr.msk.f32.vlgmr.msra.gmra.mrb[24].mxu0 %vm44_vm0, %v3750_v13 }
 0x6b2   :  { %3023 = vmatprep.mubr.msk.f32.mxu0 %vm44_vm0, %v3755_v14 }
 0x6b5   :  { %3024 = vmatmul.mubr.msk.f32.gmra.mrb[26].mxu0 %vm44_vm0, %v3764_v15 }
 0x6b6   :  { %3026 = vmatprep.mubr.msk.f32.mxu0 %vm44_vm0, %v3769_v16 }
 0x6b9   :  { %3027 = vmatmul.mubr.msk.f32.gmra.mrb[28].mxu0 %vm44_vm0, %v3778_v17 }
 0x6ba   :  { %3029 = vmatprep.mubr.msk.f32.mxu0 %vm44_vm0, %v3783_v18 }
 0x6bd   :  { %3030 = vmatmul.mubr.msk.f32.gmra.mrb[30].mxu0 %vm44_vm0, %v3792_v19 }
 0x6be   :  { %3076 = vmatprep.mubr.msk.f32.mxu0 %vm44_vm0, %v3737_v8 }
 0x784   :  { %v3022_v46 = vpop.f32.mrb[24].mxu0 }
 0x785   :  { %v909_v47 = vpop.f32.mrb[25].mxu0 }
 0x786   :  { %v3452_v48 = vpack.c.bf16 %v3022_v46, %v909_v47 }
 0x788   :  { %v3025_v49 = vpop.f32.mrb[26].mxu0  ;;  %3453 = vmatprep.subr.bf16.mxu1 %v3452_v48 }
 0x789   :  { %v919_v50 = vpop.f32.mrb[27].mxu0  ;;  %3455 = vmatpush3.bf16.msra.mxu1 %v3452_v48 }
 0x78a   :  { %v3456_v51 = vpack.c.bf16 %v3025_v49, %v919_v50 }
 0x78c   :  { %v3028_v52 = vpop.f32.mrb[28].mxu0  ;;  %3457 = vmatprep.subr.bf16.mxu1 %v3456_v51 }
 0x78d   :  { %v929_v53 = vpop.f32.mrb[29].mxu0  ;;  %3459 = vmatpush3.bf16.msra.mxu1 %v3456_v51 }
 0x78e   :  { %v3460_v54 = vpack.c.bf16 %v3028_v52, %v929_v53  ;;  %v1435_v53 = vld [vmem:[#allocation2 + $0x140] sm:$0xff] }
 0x790   :  { %v3031_v55 = vpop.f32.mrb[30].mxu0  ;;  %3461 = vmatprep.subr.bf16.mxu1 %v3460_v54 }
 0x791   :  { %v939_v56 = vpop.f32.mrb[31].mxu0  ;;  %3463 = vmatpush3.bf16.msra.mxu1 %v3460_v54 }
 0x792   :  { %v3464_v57 = vpack.c.bf16 %v3031_v55, %v939_v56 }
 0x794   :  { %3465 = vmatprep.subr.bf16.mxu1 %v3464_v57 }
 0x795   :  { %3467 = vmatpush3.bf16.msra.mxu1 %v3464_v57 }
 0x798   :  { %3049 = vmatmul.mubr.msk.f32.vlgmr.msra.gmra.mrb[24].mxu1 %vm44_vm0, %v950_v58 }
 0x799   :  { %3051 = vmatprep.mubr.msk.f32.mxu1 %vm44_vm0, %v951_v59 }
 0x79c   :  { %3052 = vmatmul.mubr.msk.f32.gmra.mrb[26].mxu1 %vm44_vm0, %v952_v60 }
 0x79d   :  { %3054 = vmatprep.mubr.msk.f32.mxu1 %vm44_vm0, %v953_v61 }
 0x7a0   :  { %3055 = vmatmul.mubr.msk.f32.gmra.mrb[28].mxu1 %vm44_vm0, %v954_v62 }
 0x7a1   :  { %3057 = vmatprep.mubr.msk.f32.mxu1 %vm44_vm0, %v955_v63 }
 0x7a4   :  { %3058 = vmatmul.mubr.msk.f32.gmra.mrb[30].mxu1 %vm44_vm0, %v956_v0 }
 0x7a5   :  { %3104 = vmatprep.mubr.msk.f32.mxu1 %vm44_vm0, %v1192_v21 }
 0x86b   :  { %v3050_v1 = vpop.f32.mrb[24].mxu1 }
 0x86c   :  { %v1047_v2 = vpop.f32.mrb[25].mxu1 }
 0x86d   :  { %v3468_v3 = vpack.c.bf16 %v3050_v1, %v1047_v2  ;;  %v1436_v2 = vld [vmem:[#allocation2 + $0x148] sm:$0xff] }
 0x86f   :  { %v3053_v4 = vpop.f32.mrb[26].mxu1  ;;  %3469 = vmatprep.subr.bf16.mxu0 %v3468_v3 }
 0x870   :  { %v1057_v5 = vpop.f32.mrb[27].mxu1  ;;  %3471 = vmatpush3.bf16.msra.mxu0 %v3468_v3  ;;  %v1437_v3 = vld [vmem:[#allocation2 + $0x150] sm:$0xff] }
 0x871   :  { %v3472_v6 = vpack.c.bf16 %v3053_v4, %v1057_v5  ;;  %v1438_v4 = vld [vmem:[#allocation2 + $0x158] sm:$0xff]  ;;  %v1439_v5 = vld [vmem:[#allocation2 + $0x160] sm:$0xff] }
 0x873   :  { %v3056_v7 = vpop.f32.mrb[28].mxu1  ;;  %3473 = vmatprep.subr.bf16.mxu0 %v3472_v6 }
 0x874   :  { %v1067_v9 = vpop.f32.mrb[29].mxu1  ;;  %3475 = vmatpush3.bf16.msra.mxu0 %v3472_v6  ;;  %v1440_v6 = vld [vmem:[#allocation2 + $0x168] sm:$0xff] }
 0x875   :  { %v3476_v10 = vpack.c.bf16 %v3056_v7, %v1067_v9  ;;  %v1441_v7 = vld [vmem:[#allocation2 + $0x170] sm:$0xff]  ;;  %v1442_v9 = vld [vmem:[#allocation2 + $0x178] sm:$0xff] }
 0x877   :  { %v3059_v11 = vpop.f32.mrb[30].mxu1  ;;  %3477 = vmatprep.subr.bf16.mxu0 %v3476_v10 }
 0x878   :  { %v1077_v12 = vpop.f32.mrb[31].mxu1  ;;  %3479 = vmatpush3.bf16.msra.mxu0 %v3476_v10 }
 0x879   :  { %v3480_v20 = vpack.c.bf16 %v3059_v11, %v1077_v12 }
 0x87b   :  { %3481 = vmatprep.subr.bf16.mxu0 %v3480_v20 }
 0x87c   :  { %3483 = vmatpush3.bf16.msra.mxu0 %v3480_v20 }
 0x87f   :  { %3077 = vmatmul.mubr.msk.f32.vlgmr.msra.gmra.mrb[32].mxu0 %vm44_vm0, %v3750_v13 }
 0x880   :  { %3079 = vmatprep.mubr.msk.f32.mxu0 %vm44_vm0, %v3755_v14 }
 0x883   :  { %3080 = vmatmul.mubr.msk.f32.gmra.mrb[34].mxu0 %vm44_vm0, %v3764_v15 }
 0x884   :  { %3082 = vmatprep.mubr.msk.f32.mxu0 %vm44_vm0, %v3769_v16 }
 0x887   :  { %3083 = vmatmul.mubr.msk.f32.gmra.mrb[36].mxu0 %vm44_vm0, %v3778_v17 }
 0x888   :  { %3085 = vmatprep.mubr.msk.f32.mxu0 %vm44_vm0, %v3783_v18 }
 0x88b   :  { %3086 = vmatmul.mubr.msk.f32.gmra.mrb[38].mxu0 %vm44_vm0, %v3792_v19 }
 0x88c   :  { %3132 = vmatprep.mubr.msk.f32.mxu0 %vm44_vm0, %v3737_v8 }
 0x952   :  { %v3078_v22 = vpop.f32.mrb[32].mxu0 }
 0x953   :  { %v1152_v23 = vpop.f32.mrb[33].mxu0 }
 0x954   :  { %v3484_v24 = vpack.c.bf16 %v3078_v22, %v1152_v23 }
 0x956   :  { %v3081_v25 = vpop.f32.mrb[34].mxu0  ;;  %3485 = vmatprep.subr.bf16.mxu1 %v3484_v24 }
 0x957   :  { %v1162_v26 = vpop.f32.mrb[35].mxu0  ;;  %3487 = vmatpush3.bf16.msra.mxu1 %v3484_v24 }
 0x958   :  { %v3488_v27 = vpack.c.bf16 %v3081_v25, %v1162_v26 }
 0x95a   :  { %v3084_v28 = vpop.f32.mrb[36].mxu0  ;;  %3489 = vmatprep.subr.bf16.mxu1 %v3488_v27 }
 0x95b   :  { %v1172_v29 = vpop.f32.mrb[37].mxu0  ;;  %3491 = vmatpush3.bf16.msra.mxu1 %v3488_v27 }
 0x95c   :  { %v3492_v30 = vpack.c.bf16 %v3084_v28, %v1172_v29 }
 0x95e   :  { %v3087_v31 = vpop.f32.mrb[38].mxu0  ;;  %3493 = vmatprep.subr.bf16.mxu1 %v3492_v30 }
 0x95f   :  { %v1182_v32 = vpop.f32.mrb[39].mxu0  ;;  %3495 = vmatpush3.bf16.msra.mxu1 %v3492_v30 }
 0x960   :  { %v3496_v33 = vpack.c.bf16 %v3087_v31, %v1182_v32 }
 0x962   :  { %3497 = vmatprep.subr.bf16.mxu1 %v3496_v33 }
 0x963   :  { %3499 = vmatpush3.bf16.msra.mxu1 %v3496_v33 }
 0x966   :  { %3105 = vmatmul.mubr.msk.f32.vlgmr.msra.gmra.mrb[32].mxu1 %vm44_vm0, %v1193_v34 }
 0x967   :  { %3107 = vmatprep.mubr.msk.f32.mxu1 %vm44_vm0, %v1194_v35 }
 0x96a   :  { %3108 = vmatmul.mubr.msk.f32.gmra.mrb[34].mxu1 %vm44_vm0, %v1195_v36 }
 0x96b   :  { %3110 = vmatprep.mubr.msk.f32.mxu1 %vm44_vm0, %v1196_v37 }
 0x96e   :  { %3111 = vmatmul.mubr.msk.f32.gmra.mrb[36].mxu1 %vm44_vm0, %v1197_v38 }
 0x96f   :  { %3113 = vmatprep.mubr.msk.f32.mxu1 %vm44_vm0, %v1198_v39 }
 0x972   :  { %3114 = vmatmul.mubr.msk.f32.gmra.mrb[38].mxu1 %vm44_vm0, %v1199_v40 }
 0x973   :  { %3160 = vmatprep.mubr.msk.f32.mxu1 %vm44_vm0, %v1435_v53 }
 0xa39   :  { %v3106_v41 = vpop.f32.mrb[32].mxu1 }
 0xa3a   :  { %v1290_v42 = vpop.f32.mrb[33].mxu1 }
 0xa3b   :  { %v3500_v43 = vpack.c.bf16 %v3106_v41, %v1290_v42 }
 0xa3d   :  { %v3109_v44 = vpop.f32.mrb[34].mxu1  ;;  %3501 = vmatprep.subr.bf16.mxu0 %v3500_v43 }
 0xa3e   :  { %v1300_v45 = vpop.f32.mrb[35].mxu1  ;;  %3503 = vmatpush3.bf16.msra.mxu0 %v3500_v43 }
 0xa3f   :  { %v3504_v46 = vpack.c.bf16 %v3109_v44, %v1300_v45 }
 0xa41   :  { %v3112_v47 = vpop.f32.mrb[36].mxu1  ;;  %3505 = vmatprep.subr.bf16.mxu0 %v3504_v46 }
 0xa42   :  { %v1310_v48 = vpop.f32.mrb[37].mxu1  ;;  %3507 = vmatpush3.bf16.msra.mxu0 %v3504_v46 }
 0xa43   :  { %v3508_v49 = vpack.c.bf16 %v3112_v47, %v1310_v48 }
 0xa45   :  { %v3115_v50 = vpop.f32.mrb[38].mxu1  ;;  %3509 = vmatprep.subr.bf16.mxu0 %v3508_v49 }
 0xa46   :  { %v1320_v51 = vpop.f32.mrb[39].mxu1  ;;  %3511 = vmatpush3.bf16.msra.mxu0 %v3508_v49 }
 0xa47   :  { %v3512_v52 = vpack.c.bf16 %v3115_v50, %v1320_v51 }
 0xa49   :  { %3513 = vmatprep.subr.bf16.mxu0 %v3512_v52 }
 0xa4a   :  { %3515 = vmatpush3.bf16.msra.mxu0 %v3512_v52 }
 0xa4d   :  { %3133 = vmatmul.mubr.msk.f32.vlgmr.msra.gmra.mrb[40].mxu0 %vm44_vm0, %v3750_v13 }
 0xa4e   :  { %3135 = vmatprep.mubr.msk.f32.mxu0 %vm44_vm0, %v3755_v14 }
 0xa51   :  { %3136 = vmatmul.mubr.msk.f32.gmra.mrb[42].mxu0 %vm44_vm0, %v3764_v15 }
 0xa52   :  { %3138 = vmatprep.mubr.msk.f32.mxu0 %vm44_vm0, %v3769_v16 }
 0xa55   :  { %3139 = vmatmul.mubr.msk.f32.gmra.mrb[44].mxu0 %vm44_vm0, %v3778_v17 }
 0xa56   :  { %3141 = vmatprep.mubr.msk.f32.mxu0 %vm44_vm0, %v3783_v18 }
 0xa59   :  { %3142 = vmatmul.mubr.msk.f32.gmra.mrb[46].mxu0 %vm44_vm0, %v3792_v19 }
 0xa5a   :  { %3188 = vmatprep.mubr.msk.f32.mxu0 %vm44_vm0, %v3737_v8 }
 0xb20   :  { %v3134_v54 = vpop.f32.mrb[40].mxu0 }
 0xb21   :  { %v1395_v55 = vpop.f32.mrb[41].mxu0 }
 0xb22   :  { %v3516_v56 = vpack.c.bf16 %v3134_v54, %v1395_v55 }
 0xb24   :  { %v3137_v57 = vpop.f32.mrb[42].mxu0  ;;  %3517 = vmatprep.subr.bf16.mxu1 %v3516_v56 }
 0xb25   :  { %v1405_v58 = vpop.f32.mrb[43].mxu0  ;;  %3519 = vmatpush3.bf16.msra.mxu1 %v3516_v56 }
 0xb26   :  { %v3520_v59 = vpack.c.bf16 %v3137_v57, %v1405_v58 }
 0xb28   :  { %v3140_v60 = vpop.f32.mrb[44].mxu0  ;;  %3521 = vmatprep.subr.bf16.mxu1 %v3520_v59 }
 0xb29   :  { %v1415_v61 = vpop.f32.mrb[45].mxu0  ;;  %3523 = vmatpush3.bf16.msra.mxu1 %v3520_v59 }
 0xb2a   :  { %v3524_v62 = vpack.c.bf16 %v3140_v60, %v1415_v61 }
 0xb2c   :  { %v3143_v63 = vpop.f32.mrb[46].mxu0  ;;  %3525 = vmatprep.subr.bf16.mxu1 %v3524_v62 }
 0xb2d   :  { %v1425_v0 = vpop.f32.mrb[47].mxu0  ;;  %3527 = vmatpush3.bf16.msra.mxu1 %v3524_v62 }
 0xb2e   :  { %v3528_v1 = vpack.c.bf16 %v3143_v63, %v1425_v0 }
 0xb30   :  { %3529 = vmatprep.subr.bf16.mxu1 %v3528_v1 }
 0xb31   :  { %3531 = vmatpush3.bf16.msra.mxu1 %v3528_v1 }
 0xb34   :  { %3161 = vmatmul.mubr.msk.f32.vlgmr.msra.gmra.mrb[40].mxu1 %vm44_vm0, %v1436_v2 }
 0xb35   :  { %3163 = vmatprep.mubr.msk.f32.mxu1 %vm44_vm0, %v1437_v3 }
 0xb38   :  { %3164 = vmatmul.mubr.msk.f32.gmra.mrb[42].mxu1 %vm44_vm0, %v1438_v4 }
 0xb39   :  { %3166 = vmatprep.mubr.msk.f32.mxu1 %vm44_vm0, %v1439_v5 }
 0xb3c   :  { %3167 = vmatmul.mubr.msk.f32.gmra.mrb[44].mxu1 %vm44_vm0, %v1440_v6 }
 0xb3d   :  { %3169 = vmatprep.mubr.msk.f32.mxu1 %vm44_vm0, %v1441_v7 }
 0xb40   :  { %3170 = vmatmul.mubr.msk.f32.gmra.mrb[46].mxu1 %vm44_vm0, %v1442_v9 }
 0xc07   :  { %v3162_v10 = vpop.f32.mrb[40].mxu1 }
 0xc08   :  { %v1573_v11 = vmul.f32 %v3162_v10, %v3162_v10  ;;  %v1533_v12 = vpop.f32.mrb[41].mxu1 }
 0xc09   :  { %v1572_v20 = vmul.f32 %v1533_v12, %v1533_v12 }
 0xc0a   :  { %v1581_v21 = vsel %vm805_vm1, %v1573_v11, 0.0 }
 0xc0b   :  { %v1580_v22 = vsel %vm805_vm1, %v1572_v20, 0.0  ;;  %v3165_v23 = vpop.f32.mrb[42].mxu1  ;;  %v1725_v20 = vld [vmem:[#allocation2 + $0x190] sm:$0xff] }
 0xc0c   :  { %v1582_v24 = vadd.f32 %v1581_v21, %v1580_v22  ;;  %v1543_v25 = vpop.f32.mrb[43].mxu1  ;;  %v1575_v26 = vmul.f32 %v3165_v23, %v3165_v23  ;;  %v1726_v21 = vld [vmem:[#allocation2 + $0x198] sm:$0xff]  ;;  %v1727_v22 = vld [vmem:[#allocation2 + $0x1a0] sm:$0xff] }
 0xc0d   :  { %v1574_v27 = vmul.f32 %v1543_v25, %v1543_v25 }
 0xc0e   :  { %v1585_v32 = vsel %vm805_vm1, %v1575_v26, 0.0 }
 0xc0f   :  { %v1583_v28 = vsel %vm805_vm1, %v1574_v27, 0.0  ;;  %v3168_v29 = vpop.f32.mrb[44].mxu1 }
 0xc10   :  { %v1584_v30 = vadd.f32 %v1583_v28, %v1582_v24  ;;  %v1553_v31 = vpop.f32.mrb[45].mxu1  ;;  %v1577_v33 = vmul.f32 %v3168_v29, %v3168_v29  ;;  %v1729_v24 = vld [vmem:[#allocation2 + $0x1b0] sm:$0xff] }
 0xc11   :  { %v1576_v34 = vmul.f32 %v1553_v31, %v1553_v31 }
 0xc12   :  { %v1586_v35 = vadd.f32 %v1585_v32, %v1584_v30  ;;  %v1589_v40 = vsel %vm805_vm1, %v1577_v33, 0.0 }
 0xc13   :  { %v1587_v36 = vsel %vm805_vm1, %v1576_v34, 0.0  ;;  %v3171_v37 = vpop.f32.mrb[46].mxu1 }
 0xc14   :  { %v1588_v38 = vadd.f32 %v1587_v36, %v1586_v35  ;;  %v1563_v39 = vpop.f32.mrb[47].mxu1  ;;  %v1579_v41 = vmul.f32 %v3171_v37, %v3171_v37 }
 0xc15   :  { %v1578_v42 = vmul.f32 %v1563_v39, %v1563_v39 }
 0xc16   :  { %v1590_v43 = vadd.f32 %v1589_v40, %v1588_v38  ;;  %v1593_v46 = vsel %vm805_vm1, %v1579_v41, 0.0  ;;  %v3969_v38 = vld [vmem:[%s4089_s0 + $0x8] sm:$0xff]  ;;  %v3983_v40 = vld [vmem:[%s4089_s0 + $0x18] sm:$0xff]  ;;  %v3990_v41 = vld [vmem:[%s4089_s0 + $0x20] sm:$0xff] }
 0xc17   :  { %v1591_v44 = vsel %vm805_vm1, %v1578_v42, 0.0  ;;  %v3997_v42 = vld [vmem:[%s4089_s0 + $0x28] sm:$0xff] }
 0xc18   :  { %v1592_v45 = vadd.f32 %v1591_v44, %v1590_v43  ;;  %v4004_v43 = vld [vmem:[%s4089_s0 + $0x30] sm:$0xff]  ;;  %v4011_v44 = vld [vmem:[%s4089_s0 + $0x38] sm:$0xff] }
 0xc1a   :  { %v1594_v47 = vadd.f32 %v1593_v46, %v1592_v45  ;;  %v3656_v45 = vld [vmem:[%s4089_s0] sm:$0xff] }
 0xc1b   :  { %v1966_v46 = vld [vmem:[#allocation2 + $0x1c0] sm:$0xff] }
 0xc1c   :  { %1595 = vadd.xlane.f32.xlu0 %v1594_v47 }
 0xca9   :  { %v1596_v48 = vpop.xlane.xlu0 %1595 }
 0xcaa   :  { %v1597_v49 = vrot.slane %v1596_v48, 4 }
 0xcac   :  { %v1598_v50 = vadd.f32 %v1597_v49, %v1596_v48 }
 0xcae   :  { %v1599_v51 = vrot.slane %v1598_v50, 2 }
 0xcb0   :  { %v1600_v52 = vadd.f32 %v1599_v51, %v1598_v50 }
 0xcb2   :  { %v1601_v53 = vrot.slane %v1600_v52, 1 }
 0xcb4   :  { %v1602_v54 = vadd.f32 %v1601_v53, %v1600_v52 }
 0xcb6   :  { %3632 = vpush %v1602_v54 }
 0xce7   :  { %s3633_s5 = spop %3632 }
 0xce8   :  { %s1604_s6 = sadd.f32 1e-12, %s3633_s5 }
 0xcea   :  { %v1605_v55 = vstv %s1604_s6 }
 0xceb   :  { %3645 = vrsqrt.f32 %v1605_v55 }
 0xcf5   :  { %v3646_v56 = vpop.eup %3645 }
 0xcf6   :  { %3634 = vpush %v3646_v56 }
 0xd27   :  { %s3635_s1 = spop %3634 }
 0xd28   :  { %v1608_v57 = vstv %s3635_s1 }
 0xd29   :  { %v1609_v58 = vmul.f32 %v1608_v57, %v1533_v12  ;;  %v1610_v59 = vmul.f32 %v3162_v10, %v1608_v57  ;;  %v1611_v60 = vmul.f32 %v1608_v57, %v1543_v25  ;;  %v1612_v61 = vmul.f32 %v3165_v23, %v1608_v57  ;;  %v1724_v12 = vld [vmem:[#allocation2 + $0x188] sm:$0xff]  ;;  %v1730_v25 = vld [vmem:[#allocation2 + $0x1b8] sm:$0xff] }
 0xd2a   :  { %v1613_v62 = vmul.f32 %v1608_v57, %v1553_v31  ;;  %v1614_v63 = vmul.f32 %v3168_v29, %v1608_v57  ;;  %v1615_v0 = vmul.f32 %v1608_v57, %v1563_v39  ;;  %v1616_v1 = vmul.f32 %v3171_v37, %v1608_v57  ;;  %v1728_v23 = vld [vmem:[#allocation2 + $0x1a8] sm:$0xff]  ;;  %v3976_v39 = vld [vmem:[%s4089_s0 + $0x10] sm:$0xff] }
 0xd2b   :  { %v3532_v2 = vpack.c.bf16 %v1610_v59, %v1609_v58  ;;  %v3536_v3 = vpack.c.bf16 %v1612_v61, %v1611_v60  ;;  %v1967_v59 = vld [vmem:[#allocation2 + $0x1c8] sm:$0xff]  ;;  %v1968_v60 = vld [vmem:[#allocation2 + $0x1d0] sm:$0xff]  ;;  %v1969_v61 = vld [vmem:[#allocation2 + $0x1d8] sm:$0xff] }
 0xd2c   :  { %v3540_v4 = vpack.c.bf16 %v1614_v63, %v1613_v62  ;;  %v3544_v5 = vpack.c.bf16 %v1616_v1, %v1615_v0  ;;  %v1970_v62 = vld [vmem:[#allocation2 + $0x1e0] sm:$0xff]  ;;  %v1971_v63 = vld [vmem:[#allocation2 + $0x1e8] sm:$0xff]  ;;  %v1972_v0 = vld [vmem:[#allocation2 + $0x1f0] sm:$0xff] }
 0xd2d   :  { %3533 = vmatprep.subr.bf16.mxu0 %v3532_v2  ;;  %v1973_v1 = vld [vmem:[#allocation2 + $0x1f8] sm:$0xff] }
 0xd2e   :  { %3535 = vmatpush3.bf16.msra.mxu0 %v3532_v2 }
 0xd2f   :  { %3537 = vmatprep.subr.bf16.mxu0 %v3536_v3 }
 0xd32   :  { %3539 = vmatpush3.bf16.msra.mxu0 %v3536_v3 }
 0xd33   :  { %3541 = vmatprep.subr.bf16.mxu0 %v3540_v4 }
 0xd36   :  { %3543 = vmatpush3.bf16.msra.mxu0 %v3540_v4 }
 0xd37   :  { %3545 = vmatprep.subr.bf16.mxu0 %v3544_v5 }
 0xd3a   :  { %3547 = vmatpush3.bf16.msra.mxu0 %v3544_v5 }
 0xd3d   :  { %3189 = vmatmul.mubr.msk.f32.vlgmr.msra.gmra.mrb[48].mxu0 %vm44_vm0, %v3750_v13  ;;  %v1723_v13 = vld [vmem:[#allocation2 + $0x180] sm:$0xff] }
 0xd3e   :  { %3191 = vmatprep.mubr.msk.f32.mxu0 %vm44_vm0, %v3755_v14  ;;  %3216 = vmatprep.mubr.msk.f32.mxu1 %vm44_vm0, %v1723_v13 }
 0xd41   :  { %3192 = vmatmul.mubr.msk.f32.gmra.mrb[50].mxu0 %vm44_vm0, %v3764_v15 }
 0xd42   :  { %3194 = vmatprep.mubr.msk.f32.mxu0 %vm44_vm0, %v3769_v16 }
 0xd45   :  { %3195 = vmatmul.mubr.msk.f32.gmra.mrb[52].mxu0 %vm44_vm0, %v3778_v17 }
 0xd46   :  { %3197 = vmatprep.mubr.msk.f32.mxu0 %vm44_vm0, %v3783_v18 }
 0xd49   :  { %3198 = vmatmul.mubr.msk.f32.gmra.mrb[54].mxu0 %vm44_vm0, %v3792_v19 }
 0xd4a   :  { %3244 = vmatprep.mubr.msk.f32.mxu0 %vm44_vm0, %v3737_v8 }
 0xe10   :  { %v3190_v14 = vpop.f32.mrb[48].mxu0 }
 0xe11   :  { %v1683_v15 = vpop.f32.mrb[49].mxu0 }
 0xe12   :  { %v3548_v6 = vpack.c.bf16 %v3190_v14, %v1683_v15 }
 0xe14   :  { %v3193_v7 = vpop.f32.mrb[50].mxu0  ;;  %3549 = vmatprep.subr.bf16.mxu1 %v3548_v6 }
 0xe15   :  { %v1693_v16 = vpop.f32.mrb[51].mxu0  ;;  %3551 = vmatpush3.bf16.msra.mxu1 %v3548_v6 }
 0xe16   :  { %v3552_v17 = vpack.c.bf16 %v3193_v7, %v1693_v16 }
 0xe18   :  { %v3196_v9 = vpop.f32.mrb[52].mxu0  ;;  %3553 = vmatprep.subr.bf16.mxu1 %v3552_v17 }
 0xe19   :  { %v1703_v18 = vpop.f32.mrb[53].mxu0  ;;  %3555 = vmatpush3.bf16.msra.mxu1 %v3552_v17 }
 0xe1a   :  { %v3556_v10 = vpack.c.bf16 %v3196_v9, %v1703_v18  ;;  %v2209_v18 = vld [vmem:[#allocation2 + $0x200] sm:$0xff] }
 0xe1c   :  { %v3199_v19 = vpop.f32.mrb[54].mxu0  ;;  %3557 = vmatprep.subr.bf16.mxu1 %v3556_v10 }
 0xe1d   :  { %v1713_v11 = vpop.f32.mrb[55].mxu0  ;;  %3559 = vmatpush3.bf16.msra.mxu1 %v3556_v10 }
 0xe1e   :  { %v3560_v8 = vpack.c.bf16 %v3199_v19, %v1713_v11 }
 0xe20   :  { %3561 = vmatprep.subr.bf16.mxu1 %v3560_v8 }
 0xe21   :  { %3563 = vmatpush3.bf16.msra.mxu1 %v3560_v8 }
 0xe24   :  { %3217 = vmatmul.mubr.msk.f32.vlgmr.msra.gmra.mrb[48].mxu1 %vm44_vm0, %v1724_v12 }
 0xe25   :  { %3219 = vmatprep.mubr.msk.f32.mxu1 %vm44_vm0, %v1725_v20 }
 0xe28   :  { %3220 = vmatmul.mubr.msk.f32.gmra.mrb[50].mxu1 %vm44_vm0, %v1726_v21 }
 0xe29   :  { %3222 = vmatprep.mubr.msk.f32.mxu1 %vm44_vm0, %v1727_v22 }
 0xe2c   :  { %3223 = vmatmul.mubr.msk.f32.gmra.mrb[52].mxu1 %vm44_vm0, %v1728_v23 }
 0xe2d   :  { %3225 = vmatprep.mubr.msk.f32.mxu1 %vm44_vm0, %v1729_v24 }
 0xe30   :  { %3226 = vmatmul.mubr.msk.f32.gmra.mrb[54].mxu1 %vm44_vm0, %v1730_v25 }
 0xe31   :  { %3272 = vmatprep.mubr.msk.f32.mxu1 %vm44_vm0, %v1966_v46 }
 0xef7   :  { %v3218_v26 = vpop.f32.mrb[48].mxu1 }
 0xef8   :  { %v1821_v27 = vpop.f32.mrb[49].mxu1 }
 0xef9   :  { %v3564_v28 = vpack.c.bf16 %v3218_v26, %v1821_v27  ;;  %v2210_v27 = vld [vmem:[#allocation2 + $0x208] sm:$0xff] }
 0xefb   :  { %v3221_v29 = vpop.f32.mrb[50].mxu1  ;;  %3565 = vmatprep.subr.bf16.mxu0 %v3564_v28 }
 0xefc   :  { %v1831_v30 = vpop.f32.mrb[51].mxu1  ;;  %3567 = vmatpush3.bf16.msra.mxu0 %v3564_v28  ;;  %v2211_v28 = vld [vmem:[#allocation2 + $0x210] sm:$0xff] }
 0xefd   :  { %v3568_v31 = vpack.c.bf16 %v3221_v29, %v1831_v30  ;;  %v2212_v29 = vld [vmem:[#allocation2 + $0x218] sm:$0xff]  ;;  %v2213_v30 = vld [vmem:[#allocation2 + $0x220] sm:$0xff] }
 0xeff   :  { %v3224_v32 = vpop.f32.mrb[52].mxu1  ;;  %3569 = vmatprep.subr.bf16.mxu0 %v3568_v31 }
 0xf00   :  { %v1841_v33 = vpop.f32.mrb[53].mxu1  ;;  %3571 = vmatpush3.bf16.msra.mxu0 %v3568_v31  ;;  %v2214_v31 = vld [vmem:[#allocation2 + $0x228] sm:$0xff] }
 0xf01   :  { %v3572_v34 = vpack.c.bf16 %v3224_v32, %v1841_v33  ;;  %v2215_v32 = vld [vmem:[#allocation2 + $0x230] sm:$0xff]  ;;  %v2216_v33 = vld [vmem:[#allocation2 + $0x238] sm:$0xff] }
 0xf03   :  { %v3227_v35 = vpop.f32.mrb[54].mxu1  ;;  %3573 = vmatprep.subr.bf16.mxu0 %v3572_v34 }
 0xf04   :  { %v1851_v36 = vpop.f32.mrb[55].mxu1  ;;  %3575 = vmatpush3.bf16.msra.mxu0 %v3572_v34 }
 0xf05   :  { %v3576_v37 = vpack.c.bf16 %v3227_v35, %v1851_v36 }
 0xf07   :  { %3577 = vmatprep.subr.bf16.mxu0 %v3576_v37 }
 0xf08   :  { %3579 = vmatpush3.bf16.msra.mxu0 %v3576_v37 }
 0xf0b   :  { %3245 = vmatmul.mubr.msk.f32.vlgmr.msra.gmra.mrb[56].mxu0 %vm44_vm0, %v3969_v38 }
 0xf0c   :  { %3247 = vmatprep.mubr.msk.f32.mxu0 %vm44_vm0, %v3976_v39 }
 0xf0f   :  { %3248 = vmatmul.mubr.msk.f32.gmra.mrb[58].mxu0 %vm44_vm0, %v3983_v40 }
 0xf10   :  { %3250 = vmatprep.mubr.msk.f32.mxu0 %vm44_vm0, %v3990_v41 }
 0xf13   :  { %3251 = vmatmul.mubr.msk.f32.gmra.mrb[60].mxu0 %vm44_vm0, %v3997_v42 }
 0xf14   :  { %3253 = vmatprep.mubr.msk.f32.mxu0 %vm44_vm0, %v4004_v43 }
 0xf17   :  { %3254 = vmatmul.mubr.msk.f32.gmra.mrb[62].mxu0 %vm44_vm0, %v4011_v44 }
 0xf18   :  { %3300 = vmatprep.mubr.msk.f32.mxu0 %vm44_vm0, %v3656_v45 }
 0xfde   :  { %v3246_v47 = vpop.f32.mrb[56].mxu0 }
 0xfdf   :  { %v1926_v48 = vpop.f32.mrb[57].mxu0 }
 0xfe0   :  { %v3580_v49 = vpack.c.bf16 %v3246_v47, %v1926_v48 }
 0xfe2   :  { %v3249_v50 = vpop.f32.mrb[58].mxu0  ;;  %3581 = vmatprep.subr.bf16.mxu1 %v3580_v49 }
 0xfe3   :  { %v1936_v51 = vpop.f32.mrb[59].mxu0  ;;  %3583 = vmatpush3.bf16.msra.mxu1 %v3580_v49 }
 0xfe4   :  { %v3584_v52 = vpack.c.bf16 %v3249_v50, %v1936_v51 }
 0xfe6   :  { %v3252_v53 = vpop.f32.mrb[60].mxu0  ;;  %3585 = vmatprep.subr.bf16.mxu1 %v3584_v52 }
 0xfe7   :  { %v1946_v54 = vpop.f32.mrb[61].mxu0  ;;  %3587 = vmatpush3.bf16.msra.mxu1 %v3584_v52 }
 0xfe8   :  { %v3588_v55 = vpack.c.bf16 %v3252_v53, %v1946_v54 }
 0xfea   :  { %v3255_v56 = vpop.f32.mrb[62].mxu0  ;;  %3589 = vmatprep.subr.bf16.mxu1 %v3588_v55 }
 0xfeb   :  { %v1956_v57 = vpop.f32.mrb[63].mxu0  ;;  %3591 = vmatpush3.bf16.msra.mxu1 %v3588_v55 }
 0xfec   :  { %v3592_v58 = vpack.c.bf16 %v3255_v56, %v1956_v57 }
 0xfee   :  { %3593 = vmatprep.subr.bf16.mxu1 %v3592_v58 }
 0xfef   :  { %3595 = vmatpush3.bf16.msra.mxu1 %v3592_v58 }
 0xff2   :  { %3273 = vmatmul.mubr.msk.f32.vlgmr.msra.gmra.mrb[56].mxu1 %vm44_vm0, %v1967_v59 }
 0xff3   :  { %3275 = vmatprep.mubr.msk.f32.mxu1 %vm44_vm0, %v1968_v60 }
 0xff6   :  { %3276 = vmatmul.mubr.msk.f32.gmra.mrb[58].mxu1 %vm44_vm0, %v1969_v61 }
 0xff7   :  { %3278 = vmatprep.mubr.msk.f32.mxu1 %vm44_vm0, %v1970_v62 }
 0xffa   :  { %3279 = vmatmul.mubr.msk.f32.gmra.mrb[60].mxu1 %vm44_vm0, %v1971_v63 }
 0xffb   :  { %3281 = vmatprep.mubr.msk.f32.mxu1 %vm44_vm0, %v1972_v0 }
 0xffe   :  { %3282 = vmatmul.mubr.msk.f32.gmra.mrb[62].mxu1 %vm44_vm0, %v1973_v1 }
 0xfff   :  { %3328 = vmatprep.mubr.msk.f32.mxu1 %vm44_vm0, %v2209_v18 }
0x10c5   :  { %v3274_v2 = vpop.f32.mrb[56].mxu1 }
0x10c6   :  { %v2064_v3 = vpop.f32.mrb[57].mxu1 }
0x10c7   :  { %v3596_v4 = vpack.c.bf16 %v3274_v2, %v2064_v3 }
0x10c9   :  { %v3277_v5 = vpop.f32.mrb[58].mxu1  ;;  %3597 = vmatprep.subr.bf16.mxu0 %v3596_v4 }
0x10ca   :  { %v2074_v13 = vpop.f32.mrb[59].mxu1  ;;  %3599 = vmatpush3.bf16.msra.mxu0 %v3596_v4 }
0x10cb   :  { %v3600_v14 = vpack.c.bf16 %v3277_v5, %v2074_v13 }
0x10cd   :  { %v3280_v15 = vpop.f32.mrb[60].mxu1  ;;  %3601 = vmatprep.subr.bf16.mxu0 %v3600_v14 }
0x10ce   :  { %v2084_v6 = vpop.f32.mrb[61].mxu1  ;;  %3603 = vmatpush3.bf16.msra.mxu0 %v3600_v14 }
0x10cf   :  { %v3604_v7 = vpack.c.bf16 %v3280_v15, %v2084_v6 }
0x10d1   :  { %v3283_v16 = vpop.f32.mrb[62].mxu1  ;;  %3605 = vmatprep.subr.bf16.mxu0 %v3604_v7 }
0x10d2   :  { %v2094_v17 = vpop.f32.mrb[63].mxu1  ;;  %3607 = vmatpush3.bf16.msra.mxu0 %v3604_v7 }
0x10d3   :  { %v3608_v9 = vpack.c.bf16 %v3283_v16, %v2094_v17 }
0x10d5   :  { %3609 = vmatprep.subr.bf16.mxu0 %v3608_v9 }
0x10d6   :  { %3611 = vmatpush3.bf16.msra.mxu0 %v3608_v9 }
0x10d9   :  { %3301 = vmatmul.mubr.msk.f32.vlgmr.msra.gmra.mrb[64].mxu0 %vm44_vm0, %v3969_v38 }
0x10da   :  { %3303 = vmatprep.mubr.msk.f32.mxu0 %vm44_vm0, %v3976_v39 }
0x10dd   :  { %3304 = vmatmul.mubr.msk.f32.gmra.mrb[66].mxu0 %vm44_vm0, %v3983_v40 }
0x10de   :  { %3306 = vmatprep.mubr.msk.f32.mxu0 %vm44_vm0, %v3990_v41 }
0x10e1   :  { %3307 = vmatmul.mubr.msk.f32.gmra.mrb[68].mxu0 %vm44_vm0, %v3997_v42 }
0x10e2   :  { %3309 = vmatprep.mubr.msk.f32.mxu0 %vm44_vm0, %v4004_v43 }
0x10e5   :  { %3310 = vmatmul.mubr.msk.f32.gmra.mrb[70].mxu0 %vm44_vm0, %v4011_v44 }
0x11ac   :  { %v3302_v10 = vpop.f32.mrb[64].mxu0 }
0x11ad   :  { %v2169_v19 = vpop.f32.mrb[65].mxu0 }
0x11ae   :  { %v3612_v11 = vpack.c.bf16 %v3302_v10, %v2169_v19 }
0x11b0   :  { %v3305_v8 = vpop.f32.mrb[66].mxu0  ;;  %3613 = vmatprep.subr.bf16.mxu1 %v3612_v11 }
0x11b1   :  { %v2179_v12 = vpop.f32.mrb[67].mxu0  ;;  %3615 = vmatpush3.bf16.msra.mxu1 %v3612_v11 }
0x11b2   :  { %v3616_v20 = vpack.c.bf16 %v3305_v8, %v2179_v12 }
0x11b4   :  { %v3308_v21 = vpop.f32.mrb[68].mxu0  ;;  %3617 = vmatprep.subr.bf16.mxu1 %v3616_v20 }
0x11b5   :  { %v2189_v22 = vpop.f32.mrb[69].mxu0  ;;  %3619 = vmatpush3.bf16.msra.mxu1 %v3616_v20 }
0x11b6   :  { %v3620_v23 = vpack.c.bf16 %v3308_v21, %v2189_v22 }
0x11b8   :  { %v3311_v24 = vpop.f32.mrb[70].mxu0  ;;  %3621 = vmatprep.subr.bf16.mxu1 %v3620_v23 }
0x11b9   :  { %v2199_v25 = vpop.f32.mrb[71].mxu0  ;;  %3623 = vmatpush3.bf16.msra.mxu1 %v3620_v23 }
0x11ba   :  { %v3624_v26 = vpack.c.bf16 %v3311_v24, %v2199_v25 }
0x11bc   :  { %3625 = vmatprep.subr.bf16.mxu1 %v3624_v26 }
0x11bd   :  { %3627 = vmatpush3.bf16.msra.mxu1 %v3624_v26 }
0x11c0   :  { %3329 = vmatmul.mubr.msk.f32.vlgmr.msra.gmra.mrb[64].mxu1 %vm44_vm0, %v2210_v27 }
0x11c1   :  { %3331 = vmatprep.mubr.msk.f32.mxu1 %vm44_vm0, %v2211_v28 }
0x11c4   :  { %3332 = vmatmul.mubr.msk.f32.gmra.mrb[66].mxu1 %vm44_vm0, %v2212_v29 }
0x11c5   :  { %3334 = vmatprep.mubr.msk.f32.mxu1 %vm44_vm0, %v2213_v30 }
0x11c8   :  { %3335 = vmatmul.mubr.msk.f32.gmra.mrb[68].mxu1 %vm44_vm0, %v2214_v31 }
0x11c9   :  { %3337 = vmatprep.mubr.msk.f32.mxu1 %vm44_vm0, %v2215_v32 }
0x11cc   :  { %3338 = vmatmul.mubr.msk.f32.gmra.mrb[70].mxu1 %vm44_vm0, %v2216_v33 }
0x1293   :  { %v3330_v34 = vpop.f32.mrb[64].mxu1 }
0x1294   :  { %v2347_v35 = vmul.f32 %v3330_v34, %v3330_v34  ;;  %v2307_v36 = vpop.f32.mrb[65].mxu1 }
0x1295   :  { %v2346_v37 = vmul.f32 %v2307_v36, %v2307_v36 }
0x1296   :  { %v2355_v38 = vsel %vm805_vm1, %v2347_v35, 0.0 }
0x1297   :  { %v2354_v39 = vsel %vm805_vm1, %v2346_v37, 0.0  ;;  %v3333_v40 = vpop.f32.mrb[66].mxu1 }
0x1298   :  { %v2356_v41 = vadd.f32 %v2355_v38, %v2354_v39  ;;  %v2317_v42 = vpop.f32.mrb[67].mxu1  ;;  %v2349_v43 = vmul.f32 %v3333_v40, %v3333_v40 }
0x1299   :  { %v2348_v44 = vmul.f32 %v2317_v42, %v2317_v42 }
0x129a   :  { %v2359_v49 = vsel %vm805_vm1, %v2349_v43, 0.0 }
0x129b   :  { %v2357_v45 = vsel %vm805_vm1, %v2348_v44, 0.0  ;;  %v3336_v46 = vpop.f32.mrb[68].mxu1 }
0x129c   :  { %v2358_v47 = vadd.f32 %v2357_v45, %v2356_v41  ;;  %v2327_v48 = vpop.f32.mrb[69].mxu1  ;;  %v2351_v50 = vmul.f32 %v3336_v46, %v3336_v46 }
0x129d   :  { %v2350_v51 = vmul.f32 %v2327_v48, %v2327_v48 }
0x129e   :  { %v2360_v52 = vadd.f32 %v2359_v49, %v2358_v47  ;;  %v2363_v57 = vsel %vm805_vm1, %v2351_v50, 0.0 }
0x129f   :  { %v2361_v53 = vsel %vm805_vm1, %v2350_v51, 0.0  ;;  %v3339_v54 = vpop.f32.mrb[70].mxu1 }
0x12a0   :  { %v2362_v55 = vadd.f32 %v2361_v53, %v2360_v52  ;;  %v2337_v56 = vpop.f32.mrb[71].mxu1  ;;  %v2353_v58 = vmul.f32 %v3339_v54, %v3339_v54 }
0x12a1   :  { %v2352_v59 = vmul.f32 %v2337_v56, %v2337_v56 }
0x12a2   :  { %v2364_v60 = vadd.f32 %v2363_v57, %v2362_v55  ;;  %v2367_v63 = vsel %vm805_vm1, %v2353_v58, 0.0 }
0x12a3   :  { %v2365_v61 = vsel %vm805_vm1, %v2352_v59, 0.0 }
0x12a4   :  { %v2366_v62 = vadd.f32 %v2365_v61, %v2364_v60 }
0x12a6   :  { %v2368_v0 = vadd.f32 %v2367_v63, %v2366_v62 }
0x12a8   :  { %2369 = vadd.xlane.f32.xlu1 %v2368_v0 }
0x1335   :  { %v2370_v1 = vpop.xlane.xlu1 %2369 }
0x1336   :  { %v2371_v2 = vrot.slane %v2370_v1, 4 }
0x1338   :  { %v2372_v3 = vadd.f32 %v2371_v2, %v2370_v1 }
0x133a   :  { %v2373_v4 = vrot.slane %v2372_v3, 2 }
0x133c   :  { %v2374_v5 = vadd.f32 %v2373_v4, %v2372_v3 }
0x133e   :  { %v2375_v13 = vrot.slane %v2374_v5, 1 }
0x1340   :  { %v2376_v14 = vadd.f32 %v2375_v13, %v2374_v5 }
0x1342   :  { %3636 = vpush %v2376_v14 }
0x1373   :  { %s3637_s0 = spop %3636 }
0x1374   :  { %s2378_s22 = sadd.f32 1e-12, %s3637_s0 }
0x1376   :  { %v2379_v15 = vstv %s2378_s22 }
0x1377   :  { %3647 = vrsqrt.f32 %v2379_v15 }
0x1381   :  { %v3648_v6 = vpop.eup %3647 }
0x1382   :  { %3638 = vpush %v3648_v6 }
0x13b3   :  { %s3639_s23 = spop %3638 }
0x13b4   :  { %v2382_v7 = vstv %s3639_s23 }
0x13b5   :  { %v2383_v16 = vmul.f32 %v2382_v7, %v2307_v36  ;;  %v2384_v17 = vmul.f32 %v3330_v34, %v2382_v7  ;;  %v2385_v9 = vmul.f32 %v2382_v7, %v2317_v42  ;;  %v2386_v18 = vmul.f32 %v3333_v40, %v2382_v7 }
0x13b6   :  { %v2387_v10 = vmul.f32 %v2382_v7, %v2327_v48  ;;  %v2388_v19 = vmul.f32 %v3336_v46, %v2382_v7  ;;  %v2389_v11 = vmul.f32 %v2382_v7, %v2337_v56  ;;  %v2390_v8 = vmul.f32 %v3339_v54, %v2382_v7 }
0x13b7   :  { %2391 = vst.msk [vmem:[%s4092_s3] sm:$0xff] %vm805_vm1, %v2383_v16  ;;  %2392 = vst.msk [vmem:[%s4092_s3 + $0x8] sm:$0xff] %vm805_vm1, %v2384_v17 }
0x13b8   :  { %2393 = vst.msk [vmem:[%s4092_s3 + $0x10] sm:$0xff] %vm805_vm1, %v2385_v9  ;;  %2394 = vst.msk [vmem:[%s4092_s3 + $0x18] sm:$0xff] %vm805_vm1, %v2386_v18 }
0x13b9   :  { %2395 = vst.msk [vmem:[%s4092_s3 + $0x20] sm:$0xff] %vm805_vm1, %v2387_v10  ;;  %2396 = vst.msk [vmem:[%s4092_s3 + $0x28] sm:$0xff] %vm805_vm1, %v2388_v19 }
0x13ba   :  { %2397 = vst.msk [vmem:[%s4092_s3 + $0x30] sm:$0xff] %vm805_vm1, %v2389_v11  ;;  %2398 = vst.msk [vmem:[%s4092_s3 + $0x38] sm:$0xff] %vm805_vm1, %v2390_v8 }
0x13bb   :  { %2403 = vsyncpa [#allocation3], 1 }

</bundles_post_ra>
